<compile_context>
chip_gen: v5e
topology: v5e:2x2
jax: 0.10.0
libtpu: 0.0.40
codegen_flags: <defaults>
</compile_context>

<pallas_src>
import jax
import jax.numpy as jnp
import numpy as np
from jax import lax
from jax.experimental import pallas as pl
from jax.experimental.pallas import tpu as pltpu

# ----------------------------- hyper-parameters ------------------------------
BATCH = 2
ACTION_DIM = 4
EMBED_DIM = 128            # llm hidden size
VOCAB = 512                # llm vocab size
CONTEXT = 1
SEGMENT_LENGTH = 5
N_DYNA = SEGMENT_LENGTH - CONTEXT                   # 4 dynamics steps
TOKENS_PER_DYNA = 3
PRELUDE = 8
SEQ_LEN = PRELUDE + N_DYNA * (TOKENS_PER_DYNA + 1)  # 24 tokens
ACTION_RECON_COEF = 0.1
M_ROWS = BATCH * SEQ_LEN                            # 48 (sublane aligned)

# static (Python) index tables -> static in-kernel masks / scatter matrices
START_INDEX = [PRELUDE + i * (TOKENS_PER_DYNA + 1) for i in range(N_DYNA)]
REWARD_INDEX = [s + TOKENS_PER_DYNA for s in START_INDEX]

VMEM = pltpu.MemorySpace.VMEM
SMEM = pltpu.MemorySpace.SMEM


# ---------------------------- static scatter tables ---------------------------
def _build_scatter_matrices():
    """S : scatter action_embeds rows into start_index rows of the (B*L) layout.
       T : replicate each action row over its (tokens_per_dyna+1) recon rows."""
    S = np.zeros((M_ROWS, BATCH * N_DYNA), np.float32)
    T = np.zeros((M_ROWS, BATCH * N_DYNA), np.float32)
    for b in range(BATCH):
        for i in range(N_DYNA):
            S[b * SEQ_LEN + START_INDEX[i], b * N_DYNA + i] = 1.0
            for j in range(TOKENS_PER_DYNA + 1):
                row = b * SEQ_LEN + PRELUDE + i * (TOKENS_PER_DYNA + 1) + j
                T[row, b * N_DYNA + i] = 1.0
    return S, T


# --------------------------------- fused kernel -------------------------------
def _fused_kernel(ids_ref, lab_ref, act_ref, scat_s_ref, scat_t_ref,
                  wa_ref, ba_ref, wl_ref, bl_ref, wte_ref, wh_ref, bh_ref,
                  hidden_ref, heads_ref, loss_ref):
    M, V, D, A = M_ROWS, VOCAB, EMBED_DIM, ACTION_DIM

    vocab_iota = lax.broadcasted_iota(jnp.int32, (M, V), 1)
    row_iota = lax.broadcasted_iota(jnp.int32, (M, 1), 0)
    col_iota = lax.broadcasted_iota(jnp.int32, (M, D), 1)

    # 1) token embedding lookup as an exact one-hot matmul on the MXU
    onehot_ids = (vocab_iota == ids_ref[...]).astype(jnp.float32)       # (M, V)
    emb = jnp.dot(onehot_ids, wte_ref[...],
                  preferred_element_type=jnp.float32)                   # (M, D)

    # 2) action_linear + scatter-add into the start_index rows (full-tile matmul)
    ae = jnp.dot(act_ref[...], wa_ref[...],
                 preferred_element_type=jnp.float32) + ba_ref[...]      # (B*n, D)
    emb = emb + jnp.dot(scat_s_ref[...], ae,
                        preferred_element_type=jnp.float32)             # (M, D)

    # 3) synthetic llm body: hidden = tanh(x @ W + b)
    hidden = jnp.tanh(jnp.dot(emb, wl_ref[...],
                              preferred_element_type=jnp.float32) + bl_ref[...])
    hidden_ref[...] = hidden

    # 4) tied LM head CE loss; contract against wte directly (no transpose copy)
    logits = lax.dot_general(hidden, wte_ref[...],
                             dimension_numbers=(((1,), (1,)), ((), ())),
                             preferred_element_type=jnp.float32)        # (M, V)
    mx = jnp.max(logits, axis=-1, keepdims=True)
    lse = jnp.log(jnp.sum(jnp.exp(logits - mx), axis=-1, keepdims=True)) + mx
    tgt = jnp.sum(jnp.where(vocab_iota == lab_ref[...], logits, 0.0),
                  axis=-1, keepdims=True)                               # (M, 1)
    valid = row_iota >= 0
    for b in range(BATCH):                       # mask last position of each batch
        valid = jnp.logical_and(valid, row_iota != (b + 1) * SEQ_LEN - 1)
    lm_loss = jnp.sum(jnp.where(valid, lse - tgt, 0.0)) / float(BATCH * (SEQ_LEN - 1))

    # 5) combined recon+reward head, lane-dense (cols 0..3 recon, col 4 reward)
    heads = jnp.dot(hidden, wh_ref[...],
                    preferred_element_type=jnp.float32) + bh_ref[...]   # (M, D)
    heads_ref[...] = heads

    # 6) action reconstruction MSE over the post-prelude rows, first A lanes
    target = jnp.dot(scat_t_ref[...], act_ref[...],
                     preferred_element_type=jnp.float32)                # (M, D)
    diff = heads - target
    recon_row = row_iota < 0
    for b in range(BATCH):
        recon_row = jnp.logical_or(
            recon_row,
            jnp.logical_and(row_iota >= b * SEQ_LEN + PRELUDE,
                            row_iota < (b + 1) * SEQ_LEN))
    recon_mask = jnp.logical_and(recon_row, col_iota < A)
    recon_loss = (jnp.sum(jnp.where(recon_mask, diff * diff, 0.0))
                  / float(BATCH * (SEQ_LEN - PRELUDE) * A))

    loss_ref[0, 0] = lm_loss
    loss_ref[0, 1] = recon_loss


def _cost_estimate():
    flops = int(
        2 * M_ROWS * VOCAB * EMBED_DIM                      # one-hot embedding gather
        + 2 * (BATCH * N_DYNA) * EMBED_DIM * EMBED_DIM      # action_linear
        + 2 * M_ROWS * (BATCH * N_DYNA) * EMBED_DIM         # scatter-add matmul
        + 2 * M_ROWS * EMBED_DIM * EMBED_DIM                # llm layer
        + 2 * M_ROWS * EMBED_DIM * VOCAB                    # tied LM head logits
        + 2 * M_ROWS * EMBED_DIM * EMBED_DIM                # recon+reward heads
        + 2 * M_ROWS * (BATCH * N_DYNA) * EMBED_DIM)        # recon target scatter
    transcendentals = int(M_ROWS * VOCAB + M_ROWS * EMBED_DIM + M_ROWS)
    bytes_accessed = int(4 * (
        VOCAB * EMBED_DIM + 3 * EMBED_DIM * EMBED_DIM + 3 * EMBED_DIM
        + (BATCH * N_DYNA) * EMBED_DIM + 2 * M_ROWS * (BATCH * N_DYNA)
        + 2 * M_ROWS + 2 * M_ROWS * EMBED_DIM + 2))
    return pl.CostEstimate(flops=flops, transcendentals=transcendentals,
                           bytes_accessed=bytes_accessed)


def _fused_forward_call(ids_flat, labels_flat, action_pad, scat_s, scat_t,
                        w_action_pad, b_action, w_llm, b_llm, wte,
                        w_heads, b_heads):
    out_shapes = (
        jax.ShapeDtypeStruct((M_ROWS, EMBED_DIM), jnp.float32),  # hidden
        jax.ShapeDtypeStruct((M_ROWS, EMBED_DIM), jnp.float32),  # recon|reward|pad
        jax.ShapeDtypeStruct((1, 2), jnp.float32),               # [lm, recon] losses
    )
    return pl.pallas_call(
        _fused_kernel,
        out_shape=out_shapes,
        in_specs=[pl.BlockSpec(memory_space=VMEM)] * 12,
        out_specs=(pl.BlockSpec(memory_space=VMEM),
                   pl.BlockSpec(memory_space=VMEM),
                   pl.BlockSpec(memory_space=SMEM)),
        cost_estimate=_cost_estimate(),
    )(ids_flat, labels_flat, action_pad, scat_s, scat_t,
      w_action_pad, b_action, w_llm, b_llm, wte, w_heads, b_heads)


# --------------------------------- params ------------------------------------
def init_params(key):
    ks = jax.random.split(key, 6)
    s = 0.02
    wte = s * jax.random.normal(ks[0], (VOCAB, EMBED_DIM), jnp.float32)
    # action_linear (PyTorch zero-inits this; nonzero here so the fused
    # scatter-add path is numerically exercised)
    w_action = s * jax.random.normal(ks[1], (ACTION_DIM, EMBED_DIM), jnp.float32)
    b_action = s * jax.random.normal(ks[2], (EMBED_DIM,), jnp.float32)
    w_llm = s * jax.random.normal(ks[3], (EMBED_DIM, EMBED_DIM), jnp.float32)
    b_llm = jnp.zeros((EMBED_DIM,), jnp.float32)
    w_reward = s * jax.random.normal(ks[4], (EMBED_DIM, 1), jnp.float32)
    b_reward = jnp.zeros((1,), jnp.float32)
    w_recon = s * jax.random.normal(ks[5], (EMBED_DIM, ACTION_DIM), jnp.float32)
    b_recon = jnp.zeros((ACTION_DIM,), jnp.float32)

    # derived, fused-kernel-friendly parameters (built once)
    pad_cols = EMBED_DIM - ACTION_DIM - 1
    w_heads = jnp.concatenate(
        [w_recon, w_reward, jnp.zeros((EMBED_DIM, pad_cols), jnp.float32)], axis=1)
    b_heads = jnp.concatenate(
        [b_recon, b_reward, jnp.zeros((pad_cols,), jnp.float32)]).reshape(1, EMBED_DIM)
    w_action_pad = jnp.zeros((EMBED_DIM, EMBED_DIM), jnp.float32).at[:ACTION_DIM].set(w_action)
    scat_s, scat_t = _build_scatter_matrices()

    return {
        "wte": wte,
        "w_action": w_action, "b_action": b_action,
        "w_llm": w_llm, "b_llm": b_llm,
        "w_reward": w_reward, "b_reward": b_reward,
        "w_recon": w_recon, "b_recon": b_recon,
        # fused-kernel views
        "w_heads": w_heads, "b_heads": b_heads,
        "w_action_pad": w_action_pad,
        "scatter_s": jnp.asarray(scat_s), "scatter_t": jnp.asarray(scat_t),
    }


# --------------------------------- forward -----------------------------------
def head_model_forward(params, input_ids, labels, action):
    B, L = input_ids.shape
    D, A = EMBED_DIM, ACTION_DIM

    # tiny integer/float glue (hundreds of bytes); all heavy work is in-kernel
    ids_flat = input_ids.reshape(B * L, 1).astype(jnp.int32)
    shifted = jnp.concatenate(
        [labels[:, 1:], jnp.zeros((B, 1), dtype=labels.dtype)], axis=1)
    labels_flat = shifted.reshape(B * L, 1).astype(jnp.int32)

    action_sliced = action[:, CONTEXT - 1:-1, :]                   # (B, n, A)
    action_flat = action_sliced.reshape(B * N_DYNA, A)
    action_pad = jnp.pad(action_flat, ((0, 0), (0, D - A)))        # lane-dense

    hidden_flat, heads_flat, losses = _fused_forward_call(
        ids_flat, labels_flat, action_pad,
        params["scatter_s"], params["scatter_t"],
        params["w_action_pad"], params["b_action"].reshape(1, D),
        params["w_llm"], params["b_llm"].reshape(1, D),
        params["wte"], params["w_heads"], params["b_heads"])

    hidden = hidden_flat.reshape(B, L, D)
    heads = heads_flat.reshape(B, L, D)
    lm_loss = losses[0, 0]
    recon_loss = losses[0, 1]
    total_loss = lm_loss + ACTION_RECON_COEF * recon_loss

    action_recon = heads[:, PRELUDE:, :A].reshape(B, N_DYNA, TOKENS_PER_DYNA + 1, A)
    reward_pred = heads[:, PRELUDE + TOKENS_PER_DYNA::TOKENS_PER_DYNA + 1, A:A + 1]

    return {
        "loss": total_loss,
        "lm_loss": lm_loss,
        "action_recon_loss": recon_loss,
        "hidden_states": hidden,
        "action_recon": action_recon,
        "reward_pred": reward_pred,
    }


# ---------------------------- pure-JAX reference ------------------------------
def reference_forward(params, input_ids, labels, action):
    inputs_embeds = params["wte"][input_ids]
    action_sliced = action[:, CONTEXT - 1:-1, :]
    action_embeds = action_sliced @ params["w_action"] + params["b_action"]
    new_embeds = inputs_embeds.at[:, jnp.array(START_INDEX), :].add(action_embeds)
    hidden = jnp.tanh(new_embeds @ params["w_llm"] + params["b_llm"])
    logits = hidden[:, :-1] @ params["wte"].T
    lse = jax.scipy.special.logsumexp(logits, axis=-1)
    tgt = jnp.take_along_axis(logits, labels[:, 1:, None], axis=-1)[..., 0]
    lm_loss = jnp.mean(lse - tgt)
    recon = hidden[:, PRELUDE:] @ params["w_recon"] + params["b_recon"]
    tg = jnp.repeat(action_sliced[:, :, None, :], TOKENS_PER_DYNA + 1, axis=2)
    recon = recon.reshape(tg.shape)
    recon_loss = jnp.mean((recon - tg) ** 2)
    total = lm_loss + ACTION_RECON_COEF * recon_loss
    reward = hidden[:, jnp.array(REWARD_INDEX), :] @ params["w_reward"] + params["b_reward"]
    return total, reward, recon


# ----------------------------------- main -------------------------------------
if __name__ == "__main__":
    key = jax.random.PRNGKey(0)
    kp, ki, ka = jax.random.split(key, 3)

    params = init_params(kp)
    input_ids = jax.random.randint(ki, (BATCH, SEQ_LEN), 0, VOCAB, dtype=jnp.int32)
    labels = input_ids
    action = jax.random.normal(ka, (BATCH, SEGMENT_LENGTH, ACTION_DIM), jnp.float32)

    fwd = jax.jit(head_model_forward)
    out = fwd(params, input_ids, labels, action)
    jax.block_until_ready(out)

    ref_loss, ref_reward, ref_recon = reference_forward(params, input_ids, labels, action)
    np.testing.assert_allclose(np.asarray(out["loss"]), np.asarray(ref_loss),
                               rtol=1e-3, atol=1e-3)
    np.testing.assert_allclose(np.asarray(out["reward_pred"]), np.asarray(ref_reward),
                               rtol=1e-3, atol=1e-3)
    np.testing.assert_allclose(np.asarray(out["action_recon"]), np.asarray(ref_recon),
                               rtol=1e-3, atol=1e-3)

    print("KERNEL_OK")
</pallas_src>

<mosaic_0001>
module attributes {stable_mosaic.version = 11 : i64} {
  func.func @_fused_kernel(%arg0: memref<48x1xi32, #tpu.memory_space<vmem>>, %arg1: memref<48x1xi32, #tpu.memory_space<vmem>>, %arg2: memref<8x128xf32, #tpu.memory_space<vmem>>, %arg3: memref<48x8xf32, #tpu.memory_space<vmem>>, %arg4: memref<48x8xf32, #tpu.memory_space<vmem>>, %arg5: memref<128x128xf32, #tpu.memory_space<vmem>>, %arg6: memref<1x128xf32, #tpu.memory_space<vmem>>, %arg7: memref<128x128xf32, #tpu.memory_space<vmem>>, %arg8: memref<1x128xf32, #tpu.memory_space<vmem>>, %arg9: memref<512x128xf32, #tpu.memory_space<vmem>>, %arg10: memref<128x128xf32, #tpu.memory_space<vmem>>, %arg11: memref<1x128xf32, #tpu.memory_space<vmem>>, %arg12: memref<48x128xf32, #tpu.memory_space<vmem>>, %arg13: memref<48x128xf32, #tpu.memory_space<vmem>>, %arg14: memref<1x2xf32, #tpu.memory_space<smem>>) attributes {dimension_semantics = [], scalar_prefetch = 0 : i64, scratch_operands = 0 : i64, tpu.core_type = #tpu.core_type<tc>} {
    %0 = tpu.iota {dimensions = array<i32: 1>} : vector<48x512xi32>
    %1 = tpu.iota {dimensions = array<i32: 0>} : vector<48x1xi32>
    %2 = tpu.iota {dimensions = array<i32: 1>} : vector<48x128xi32>
    %c0 = arith.constant 0 : index
    %c0_0 = arith.constant 0 : index
    %3 = vector.load %arg0[%c0, %c0_0] : memref<48x1xi32, #tpu.memory_space<vmem>>, vector<48x1xi32>
    %4 = vector.broadcast %3 : vector<48x1xi32> to vector<48x512xi32>
    %5 = arith.cmpi eq, %0, %4 : vector<48x512xi32>
    %6 = arith.extui %5 : vector<48x512xi1> to vector<48x512xi32>
    %7 = arith.sitofp %6 : vector<48x512xi32> to vector<48x512xf32>
    %c0_1 = arith.constant 0 : index
    %c0_2 = arith.constant 0 : index
    %8 = vector.load %arg9[%c0_1, %c0_2] : memref<512x128xf32, #tpu.memory_space<vmem>>, vector<512x128xf32>
    %cst = arith.constant dense<0.000000e+00> : vector<48x128xf32>
    %9 = tpu.matmul %7, %8, %cst {dimension_numbers = #tpu.dot_dimension_numbers<[1], [0], [0], [1], [0, 0, 1, 1], [], []>} : vector<48x512xf32>, vector<512x128xf32>, vector<48x128xf32> -> vector<48x128xf32>
    %c0_3 = arith.constant 0 : index
    %c0_4 = arith.constant 0 : index
    %10 = vector.load %arg2[%c0_3, %c0_4] : memref<8x128xf32, #tpu.memory_space<vmem>>, vector<8x128xf32>
    %c0_5 = arith.constant 0 : index
    %c0_6 = arith.constant 0 : index
    %11 = vector.load %arg5[%c0_5, %c0_6] : memref<128x128xf32, #tpu.memory_space<vmem>>, vector<128x128xf32>
    %cst_7 = arith.constant dense<0.000000e+00> : vector<8x128xf32>
    %12 = tpu.matmul %10, %11, %cst_7 {dimension_numbers = #tpu.dot_dimension_numbers<[1], [0], [0], [1], [0, 0, 1, 1], [], []>} : vector<8x128xf32>, vector<128x128xf32>, vector<8x128xf32> -> vector<8x128xf32>
    %c0_8 = arith.constant 0 : index
    %c0_9 = arith.constant 0 : index
    %13 = vector.load %arg6[%c0_8, %c0_9] : memref<1x128xf32, #tpu.memory_space<vmem>>, vector<1x128xf32>
    %14 = vector.broadcast %13 : vector<1x128xf32> to vector<8x128xf32>
    %15 = arith.addf %12, %14 : vector<8x128xf32>
    %c0_10 = arith.constant 0 : index
    %c0_11 = arith.constant 0 : index
    %16 = vector.load %arg3[%c0_10, %c0_11] : memref<48x8xf32, #tpu.memory_space<vmem>>, vector<48x8xf32>
    %cst_12 = arith.constant dense<0.000000e+00> : vector<48x128xf32>
    %17 = tpu.matmul %16, %15, %cst_12 {dimension_numbers = #tpu.dot_dimension_numbers<[1], [0], [0], [1], [0, 0, 1, 1], [], []>} : vector<48x8xf32>, vector<8x128xf32>, vector<48x128xf32> -> vector<48x128xf32>
    %18 = arith.addf %9, %17 : vector<48x128xf32>
    %c0_13 = arith.constant 0 : index
    %c0_14 = arith.constant 0 : index
    %19 = vector.load %arg7[%c0_13, %c0_14] : memref<128x128xf32, #tpu.memory_space<vmem>>, vector<128x128xf32>
    %cst_15 = arith.constant dense<0.000000e+00> : vector<48x128xf32>
    %20 = tpu.matmul %18, %19, %cst_15 {dimension_numbers = #tpu.dot_dimension_numbers<[1], [0], [0], [1], [0, 0, 1, 1], [], []>} : vector<48x128xf32>, vector<128x128xf32>, vector<48x128xf32> -> vector<48x128xf32>
    %c0_16 = arith.constant 0 : index
    %c0_17 = arith.constant 0 : index
    %21 = vector.load %arg8[%c0_16, %c0_17] : memref<1x128xf32, #tpu.memory_space<vmem>>, vector<1x128xf32>
    %22 = vector.broadcast %21 : vector<1x128xf32> to vector<48x128xf32>
    %23 = arith.addf %20, %22 : vector<48x128xf32>
    %24 = math.tanh %23 : vector<48x128xf32>
    %c0_18 = arith.constant 0 : index
    %c0_19 = arith.constant 0 : index
    %25 = vector.load %arg12[%c0_18, %c0_19] : memref<48x128xf32, #tpu.memory_space<vmem>>, vector<48x128xf32>
    tpu.vector_store %arg12[%c0_18, %c0_19], %24 {strides = array<i32>} : memref<48x128xf32, #tpu.memory_space<vmem>>, vector<48x128xf32>,
    %c0_20 = arith.constant 0 : index
    %c0_21 = arith.constant 0 : index
    %26 = vector.load %arg9[%c0_20, %c0_21] : memref<512x128xf32, #tpu.memory_space<vmem>>, vector<512x128xf32>
    %cst_22 = arith.constant dense<0.000000e+00> : vector<48x512xf32>
    %27 = tpu.matmul %24, %26, %cst_22 {dimension_numbers = #tpu.dot_dimension_numbers<[1], [1], [0], [0], [0, 0, 1, 0], [], []>} : vector<48x128xf32>, vector<512x128xf32>, vector<48x512xf32> -> vector<48x512xf32>
    %cst_23 = arith.constant dense<0xFF800000> : vector<48xf32>
    %28 = vector.multi_reduction <maximumf>, %27, %cst_23 [1] : vector<48x512xf32> to vector<48xf32>
    %29 = vector.shape_cast %28 : vector<48xf32> to vector<48x1xf32>
    %30 = vector.broadcast %29 : vector<48x1xf32> to vector<48x512xf32>
    %31 = arith.subf %27, %30 : vector<48x512xf32>
    %32 = math.exp %31 : vector<48x512xf32>
    %cst_24 = arith.constant dense<0.000000e+00> : vector<48xf32>
    %33 = vector.multi_reduction <add>, %32, %cst_24 [1] : vector<48x512xf32> to vector<48xf32>
    %34 = vector.shape_cast %33 : vector<48xf32> to vector<48x1xf32>
    %35 = math.log %34 : vector<48x1xf32>
    %36 = arith.addf %35, %29 : vector<48x1xf32>
    %c0_25 = arith.constant 0 : index
    %c0_26 = arith.constant 0 : index
    %37 = vector.load %arg1[%c0_25, %c0_26] : memref<48x1xi32, #tpu.memory_space<vmem>>, vector<48x1xi32>
    %38 = vector.broadcast %37 : vector<48x1xi32> to vector<48x512xi32>
    %39 = arith.cmpi eq, %0, %38 : vector<48x512xi32>
    %cst_27 = arith.constant 0.000000e+00 : f32
    %40 = vector.broadcast %cst_27 : f32 to vector<48x512xf32>
    %41 = arith.select %39, %27, %40 : vector<48x512xi1>, vector<48x512xf32>
    %cst_28 = arith.constant dense<0.000000e+00> : vector<48xf32>
    %42 = vector.multi_reduction <add>, %41, %cst_28 [1] : vector<48x512xf32> to vector<48xf32>
    %43 = vector.shape_cast %42 : vector<48xf32> to vector<48x1xf32>
    %c0_i32 = arith.constant 0 : i32
    %44 = vector.broadcast %c0_i32 : i32 to vector<48x1xi32>
    %45 = arith.cmpi sge, %1, %44 : vector<48x1xi32>
    %c23_i32 = arith.constant 23 : i32
    %46 = vector.broadcast %c23_i32 : i32 to vector<48x1xi32>
    %47 = arith.cmpi ne, %1, %46 : vector<48x1xi32>
    %48 = arith.andi %45, %47 : vector<48x1xi1>
    %c47_i32 = arith.constant 47 : i32
    %49 = vector.broadcast %c47_i32 : i32 to vector<48x1xi32>
    %50 = arith.cmpi ne, %1, %49 : vector<48x1xi32>
    %51 = arith.andi %48, %50 : vector<48x1xi1>
    %52 = arith.subf %36, %43 : vector<48x1xf32>
    %cst_29 = arith.constant 0.000000e+00 : f32
    %53 = vector.broadcast %cst_29 : f32 to vector<48x1xf32>
    %54 = arith.select %51, %52, %53 : vector<48x1xi1>, vector<48x1xf32>
    %55 = vector.shape_cast %54 : vector<48x1xf32> to vector<1x48x1xf32>
    %cst_30 = arith.constant dense<0.000000e+00> : vector<1xf32>
    %56 = vector.multi_reduction <add>, %55, %cst_30 [1, 2] : vector<1x48x1xf32> to vector<1xf32>
    %57 = vector.shape_cast %56 : vector<1xf32> to vector<1x1x1xf32>
    %58 = vector.extract %57[0, 0, 0] : f32 from vector<1x1x1xf32>
    %cst_31 = arith.constant 4.600000e+01 : f32
    %59 = arith.divf %58, %cst_31 : f32
    %c0_32 = arith.constant 0 : index
    %c0_33 = arith.constant 0 : index
    %60 = vector.load %arg10[%c0_32, %c0_33] : memref<128x128xf32, #tpu.memory_space<vmem>>, vector<128x128xf32>
    %cst_34 = arith.constant dense<0.000000e+00> : vector<48x128xf32>
    %61 = tpu.matmul %24, %60, %cst_34 {dimension_numbers = #tpu.dot_dimension_numbers<[1], [0], [0], [1], [0, 0, 1, 1], [], []>} : vector<48x128xf32>, vector<128x128xf32>, vector<48x128xf32> -> vector<48x128xf32>
    %c0_35 = arith.constant 0 : index
    %c0_36 = arith.constant 0 : index
    %62 = vector.load %arg11[%c0_35, %c0_36] : memref<1x128xf32, #tpu.memory_space<vmem>>, vector<1x128xf32>
    %63 = vector.broadcast %62 : vector<1x128xf32> to vector<48x128xf32>
    %64 = arith.addf %61, %63 : vector<48x128xf32>
    %c0_37 = arith.constant 0 : index
    %c0_38 = arith.constant 0 : index
    %65 = vector.load %arg13[%c0_37, %c0_38] : memref<48x128xf32, #tpu.memory_space<vmem>>, vector<48x128xf32>
    tpu.vector_store %arg13[%c0_37, %c0_38], %64 {strides = array<i32>} : memref<48x128xf32, #tpu.memory_space<vmem>>, vector<48x128xf32>,
    %c0_39 = arith.constant 0 : index
    %c0_40 = arith.constant 0 : index
    %66 = vector.load %arg4[%c0_39, %c0_40] : memref<48x8xf32, #tpu.memory_space<vmem>>, vector<48x8xf32>
    %c0_41 = arith.constant 0 : index
    %c0_42 = arith.constant 0 : index
    %67 = vector.load %arg2[%c0_41, %c0_42] : memref<8x128xf32, #tpu.memory_space<vmem>>, vector<8x128xf32>
    %cst_43 = arith.constant dense<0.000000e+00> : vector<48x128xf32>
    %68 = tpu.matmul %66, %67, %cst_43 {dimension_numbers = #tpu.dot_dimension_numbers<[1], [0], [0], [1], [0, 0, 1, 1], [], []>} : vector<48x8xf32>, vector<8x128xf32>, vector<48x128xf32> -> vector<48x128xf32>
    %69 = arith.subf %64, %68 : vector<48x128xf32>
    %c0_i32_44 = arith.constant 0 : i32
    %70 = vector.broadcast %c0_i32_44 : i32 to vector<48x1xi32>
    %71 = arith.cmpi slt, %1, %70 : vector<48x1xi32>
    %c8_i32 = arith.constant 8 : i32
    %72 = vector.broadcast %c8_i32 : i32 to vector<48x1xi32>
    %73 = arith.cmpi sge, %1, %72 : vector<48x1xi32>
    %c24_i32 = arith.constant 24 : i32
    %74 = vector.broadcast %c24_i32 : i32 to vector<48x1xi32>
    %75 = arith.cmpi slt, %1, %74 : vector<48x1xi32>
    %76 = arith.andi %73, %75 : vector<48x1xi1>
    %77 = arith.ori %71, %76 : vector<48x1xi1>
    %c32_i32 = arith.constant 32 : i32
    %78 = vector.broadcast %c32_i32 : i32 to vector<48x1xi32>
    %79 = arith.cmpi sge, %1, %78 : vector<48x1xi32>
    %c48_i32 = arith.constant 48 : i32
    %80 = vector.broadcast %c48_i32 : i32 to vector<48x1xi32>
    %81 = arith.cmpi slt, %1, %80 : vector<48x1xi32>
    %82 = arith.andi %79, %81 : vector<48x1xi1>
    %83 = arith.ori %77, %82 : vector<48x1xi1>
    %c4_i32 = arith.constant 4 : i32
    %84 = vector.broadcast %c4_i32 : i32 to vector<48x128xi32>
    %85 = arith.cmpi slt, %2, %84 : vector<48x128xi32>
    %86 = vector.broadcast %83 : vector<48x1xi1> to vector<48x128xi1>
    %87 = arith.andi %86, %85 : vector<48x128xi1>
    %88 = arith.mulf %69, %69 : vector<48x128xf32>
    %cst_45 = arith.constant 0.000000e+00 : f32
    %89 = vector.broadcast %cst_45 : f32 to vector<48x128xf32>
    %90 = arith.select %87, %88, %89 : vector<48x128xi1>, vector<48x128xf32>
    %91 = vector.shape_cast %90 : vector<48x128xf32> to vector<1x48x128xf32>
    %cst_46 = arith.constant dense<0.000000e+00> : vector<1xf32>
    %92 = vector.multi_reduction <add>, %91, %cst_46 [1, 2] : vector<1x48x128xf32> to vector<1xf32>
    %93 = vector.shape_cast %92 : vector<1xf32> to vector<1x1x1xf32>
    %94 = vector.extract %93[0, 0, 0] : f32 from vector<1x1x1xf32>
    %cst_47 = arith.constant 1.280000e+02 : f32
    %95 = arith.divf %94, %cst_47 : f32
    %c0_48 = arith.constant 0 : index
    %c0_49 = arith.constant 0 : index
    %96 = memref.load %arg14[%c0_48, %c0_49] : memref<1x2xf32, #tpu.memory_space<smem>>
    memref.store %59, %arg14[%c0_48, %c0_49] : memref<1x2xf32, #tpu.memory_space<smem>>
    %c0_50 = arith.constant 0 : index
    %c1 = arith.constant 1 : index
    %97 = memref.load %arg14[%c0_50, %c1] : memref<1x2xf32, #tpu.memory_space<smem>>
    memref.store %95, %arg14[%c0_50, %c1] : memref<1x2xf32, #tpu.memory_space<smem>>
    return
  }
}

</mosaic_0001>

<bundles_post_ra>
// kernel: head_model_forward.1
= control target key start
LH: loop header
LB: loop body
LE: loop exit
PB: predicated region body
PF: predicated region fallthrough
CT: control target
= control target key end

     0   :  { %20 = vsyncpa [#allocation3], 0  ;;  %s2630_s0 = inlined_call_operand.vmem [shape: s32[48,1], index: 0, kind: input, shape index: {}]   ;;  %s2631_s1 = inlined_call_operand.vmem [shape: s32[48,1], index: 1, kind: input, shape index: {}]   ;;  %s2632_s2 = inlined_call_operand.vmem [shape: f32[8,128], index: 2, kind: input, shape index: {}]   ;;  %s2633_s3 = inlined_call_operand.vmem [shape: f32[48,8], index: 3, kind: input, shape index: {}]   ;;  %s2634_s4 = inlined_call_operand.vmem [shape: f32[48,8], index: 4, kind: input, shape index: {}]   ;;  %s2635_s5 = inlined_call_operand.vmem [shape: f32[128,128], index: 5, kind: input, shape index: {}]   ;;  %s2636_s6 = inlined_call_operand.hbm [shape: f32[1,128], index: 6, kind: input, shape index: {}]   ;;  %s2637_s7 = inlined_call_operand.vmem [shape: f32[128,128], index: 7, kind: input, shape index: {}]   ;;  %s2638_s8 = inlined_call_operand.hbm [shape: f32[1,128], index: 8, kind: input, shape index: {}]   ;;  %s2639_s9 = inlined_call_operand.hbm [shape: f32[512,128], index: 9, kind: input, shape index: {}]   ;;  %s2640_s10 = inlined_call_operand.hbm [shape: f32[128,128], index: 10, kind: input, shape index: {}]   ;;  %s2641_s11 = inlined_call_operand.hbm [shape: f32[1,128], index: 11, kind: input, shape index: {}]   ;;  %s2642_s12 = inlined_call_operand.hbm [shape: f32[48,128], index: 12, kind: output, shape index: {0}]   ;;  %s2643_s13 = inlined_call_operand.vmem [shape: f32[48,128], index: 13, kind: output, shape index: {1}]   ;;  %s2644_s14 = inlined_call_operand.vmem [shape: f32[1,2], index: 14, kind: output, shape index: {2}]  }
   0x1   :  { %21 = vsyncpa [#allocation7], 0 }
   0x2   :  { %22 = vsyncpa [#allocation10], 0 }
   0x3   :  { %23 = vsyncpa [#allocation4], 0  ;;  %s55_s15 = sshll.u32 %s2638_s8, 4  ;;  %s56_s15 = int_to_ptr.hbm [resolvable:$true] %s55_s15 }
   0x4   :  { %24 = vsyncpa [#allocation5], 0  ;;  %s1735_s16 = smov [#allocation6]   ;;  %s78_s20 = sshll.u32 %s2640_s10, 4  ;;  %s79_s20 = int_to_ptr.hbm [resolvable:$true] %s78_s20 }
   0x5   :  { %s57_s17 = sshll.u32 %s1735_s16, 4  ;;  %s1736_s21 = smov [#allocation9]   ;;  %s58_s17 = int_to_ptr.vmem [resolvable:$true] %s57_s17 }
   0x6   :  { %60 = dma.hbm_to_vmem [thread:$0]  %s56_s15, 16, %s58_s17, [#allocation7]  }
   0x7   :  { %s80_s22 = sshll.u32 %s1736_s21, 4  ;;  %s42_s25 = sshll.u32 %s2636_s6, 4  ;;  %s81_s22 = int_to_ptr.vmem [resolvable:$true] %s80_s22  ;;  %s43_s25 = int_to_ptr.hbm [resolvable:$true] %s42_s25 }
   0x8   :  { %s1737_s8 = smov 128   ;;  %s1738_s26 = smov 8  }
   0x9   :  { %86 = dma.hbm_to_vmem [thread:$0]  %s79_s20, 2048, %s81_s22, [#allocation10], %s1737_s8, %s1737_s8, %s1738_s26  }
   0xa   :  { %s65_s29 = sshll.u32 %s2639_s9, 4  ;;  %s1739_s10 = smov [#allocation2]   ;;  %s66_s29 = int_to_ptr.hbm [resolvable:$true] %s65_s29 }
   0xb   :  { %s44_s30 = sshll.u32 %s1739_s10, 4  ;;  %s1740_s15 = smov [#allocation8]   ;;  %s45_s30 = int_to_ptr.vmem [resolvable:$true] %s44_s30 }
   0xc   :  { %47 = dma.hbm_to_vmem [thread:$0]  %s43_s25, 16, %s45_s30, [#allocation3]  }
   0xd   :  { %s67_s16 = sshll.u32 %s1740_s15, 4  ;;  %s92_s18 = sshll.u32 %s2641_s11, 4  ;;  %s68_s16 = int_to_ptr.vmem [resolvable:$true] %s67_s16  ;;  %s93_s18 = int_to_ptr.hbm [resolvable:$true] %s92_s18 }
   0xe   :  { %73 = dma.hbm_to_vmem [thread:$0]  %s66_s29, 8192, %s68_s16, [#allocation7], %s1737_s8, %s1737_s8, %s1738_s26  }
   0xf   :  { %s1741_s19 = smov [#allocation11]  }
  0x10   :  { %s94_s20 = sshll.u32 %s1741_s19, 4  ;;  %s95_s20 = int_to_ptr.vmem [resolvable:$true] %s94_s20 }
  0x11   :  { %97 = dma.hbm_to_vmem [thread:$0]  %s93_s18, 16, %s95_s20, [#allocation10]  }
  0x12   :  { %1725 = dma.done.wait [#allocation3], 16  }
  0x13   :  { %1726 = vsyncadd [#allocation3], 4294967280 }
  0x14   :  { %1727 = dma.done.wait [#allocation7], 8208  }
  0x15   :  { %1728 = vsyncadd [#allocation7], 4294959088 }
  0x16   :  { %1729 = dma.done.wait [#allocation10], 2064  }
  0x17   :  { %1730 = vsyncadd [#allocation10], 4294965232  ;;  %v1742_v0 = vmov 0   ;;  %v306_v1 = vld [vmem:[%s2635_s5 + $0x78] sm:$0xff]  ;;  %v305_v2 = vld [vmem:[%s2635_s5 + $0x70] sm:$0xff]  ;;  %v118_v59 = vlaneseq  ;;  %v1743_v63 = vmov 1.0  }
  0x18   :  { %1487 = vset.pattern.permute.xlu0 %v1742_v0  ;;  %1488 = vset.pattern.permute.xlu1 %v1742_v0  ;;  %v304_v3 = vld [vmem:[%s2635_s5 + $0x68] sm:$0xff]  ;;  %v303_v4 = vld [vmem:[%s2635_s5 + $0x60] sm:$0xff]  ;;  %v302_v6 = vld [vmem:[%s2635_s5 + $0x58] sm:$0xff]  ;;  %vm337_vm10 = vcmask 64512   ;;  %s1371_s20 = sshll.u32 %s2642_s12, 4  ;;  %s1385_s9 = sshll.u32 %s2644_s14, 4  ;;  %s1372_s20 = int_to_ptr.hbm [resolvable:$true] %s1371_s20  ;;  %s1386_s9 = int_to_ptr.vmem [resolvable:$true] %s1385_s9 }
  0x19   :  { %1489 = vset.pattern.permute.xlu2 %v1742_v0  ;;  %311 = vmatpush.msra.mxu0 %v306_v1  ;;  %v130_v5 = vld [vmem:[%s2630_s0] sm:$0xff]  ;;  %v132_v7 = vld [vmem:[%s2630_s0 + $0x10] sm:$0xff]  ;;  %v300_v14 = vld [vmem:[%s2635_s5 + $0x48] sm:$0xff]  ;;  %v2004_v60 = vand.u32 127, %v118_v59  ;;  %s1747_s23 = smov [#allocation13]  }
  0x1a   :  { %137 = vperm.xlu0 %1487, %v130_v5   ;;  %143 = vperm.xlu1 %1488, %v132_v7   ;;  %v134_v8 = vld [vmem:[%s2630_s0 + $0x20] sm:$0xff]  ;;  %v301_v9 = vld [vmem:[%s2635_s5 + $0x50] sm:$0xff]  ;;  %v131_v15 = vld [vmem:[%s2630_s0 + $0x8] sm:$0xff] }
  0x1b   :  { %312 = vmatpush.msra.mxu0 %v305_v2  ;;  %149 = vperm.xlu2 %1489, %v134_v8   ;;  %v1871_v10 = vld [vmem:[#allocation8 + $0x78] sm:$0xff]  ;;  %v1873_v11 = vld [vmem:[#allocation8 + $0x70] sm:$0xff]  ;;  %v1888_v16 = vld [vmem:[#allocation8 + $0x68] sm:$0xff]  ;;  %v2008_v61 = vadd.s32 128, %v2004_v60 }
  0x1c   :  { %391 = vmatpush.msra.mxu2 %v1871_v10  ;;  %v1876_v12 = vld [vmem:[#allocation8 + $0xf8] sm:$0xff]  ;;  %v1878_v13 = vld [vmem:[#allocation8 + $0xf0] sm:$0xff]  ;;  %v1890_v17 = vld [vmem:[#allocation8 + $0xe8] sm:$0xff] }
  0x1d   :  { %313 = vmatpush.msra.mxu0 %v304_v3  ;;  %426 = vmatpush.msra.mxu3 %v1876_v12  ;;  %v299_v18 = vld [vmem:[%s2635_s5 + $0x40] sm:$0xff]  ;;  %v133_v19 = vld [vmem:[%s2630_s0 + $0x18] sm:$0xff]  ;;  %v135_v20 = vld [vmem:[%s2630_s0 + $0x28] sm:$0xff] }
  0x1e   :  { %392 = vmatpush.msra.mxu2 %v1873_v11  ;;  %v1902_v21 = vld [vmem:[#allocation8 + $0x60] sm:$0xff]  ;;  %v298_v22 = vld [vmem:[%s2635_s5 + $0x38] sm:$0xff]  ;;  %v297_v25 = vld [vmem:[%s2635_s5 + $0x30] sm:$0xff] }
  0x1f   :  { %314 = vmatpush.msra.mxu0 %v303_v4  ;;  %427 = vmatpush.msra.mxu3 %v1878_v13  ;;  %v1909_v23 = vld [vmem:[#allocation8 + $0xe0] sm:$0xff]  ;;  %v1911_v24 = vld [vmem:[#allocation8 + $0x58] sm:$0xff]  ;;  %v1923_v28 = vld [vmem:[#allocation8 + $0x50] sm:$0xff] }
  0x20   :  { %393 = vmatpush.msra.mxu2 %v1888_v16  ;;  %v1917_v26 = vld [vmem:[#allocation8 + $0xd8] sm:$0xff]  ;;  %v296_v27 = vld [vmem:[%s2635_s5 + $0x28] sm:$0xff]  ;;  %v1932_v31 = vld [vmem:[#allocation8 + $0xd0] sm:$0xff] }
  0x21   :  { %315 = vmatpush.msra.mxu0 %v302_v6  ;;  %428 = vmatpush.msra.mxu3 %v1890_v17  ;;  %v953_v29 = vld [vmem:[%s2631_s1 + $0x8] sm:$0xff]  ;;  %v295_v32 = vld [vmem:[%s2635_s5 + $0x20] sm:$0xff]  ;;  %v954_v33 = vld [vmem:[%s2631_s1 + $0x10] sm:$0xff] }
  0x22   :  { %140 = vperm.xlu0 %1487, %v131_v15   ;;  %146 = vperm.xlu1 %1488, %v133_v19   ;;  %v1930_v30 = vld [vmem:[#allocation8 + $0x48] sm:$0xff]  ;;  %v1941_v34 = vld [vmem:[#allocation8 + $0x40] sm:$0xff]  ;;  %v294_v36 = vld [vmem:[%s2635_s5 + $0x18] sm:$0xff] }
  0x23   :  { %316 = vmatpush.msra.mxu0 %v301_v9  ;;  %152 = vperm.xlu2 %1489, %v135_v20   ;;  %v1943_v35 = vld [vmem:[#allocation8 + $0xc8] sm:$0xff]  ;;  %v952_v37 = vld [vmem:[%s2631_s1] sm:$0xff]  ;;  %v232_v41 = vld [vmem:[#allocation8 + $0x30] sm:$0xff] }
  0x24   :  { %394 = vmatpush.msra.mxu2 %v1902_v21  ;;  %429 = vmatpush.msra.mxu3 %v1909_v23  ;;  %v1953_v38 = vld [vmem:[#allocation8 + $0x38] sm:$0xff]  ;;  %v1955_v39 = vld [vmem:[#allocation8 + $0xc0] sm:$0xff]  ;;  %v293_v40 = vld [vmem:[%s2635_s5 + $0x10] sm:$0xff] }
  0x25   :  { %317 = vmatpush.msra.mxu0 %v300_v14  ;;  %v1962_v42 = vld [vmem:[#allocation8 + $0xb8] sm:$0xff]  ;;  %v292_v43 = vld [vmem:[%s2635_s5 + $0x8] sm:$0xff]  ;;  %v1969_v45 = vld [vmem:[#allocation8 + $0xb0] sm:$0xff] }
  0x26   :  { %395 = vmatpush.msra.mxu2 %v1911_v24  ;;  %430 = vmatpush.msra.mxu3 %v1917_v26  ;;  %v231_v44 = vld [vmem:[#allocation8 + $0x28] sm:$0xff]  ;;  %v291_v46 = vld [vmem:[%s2635_s5] sm:$0xff]  ;;  %v228_v52 = vld [vmem:[#allocation8 + $0x10] sm:$0xff] }
  0x27   :  { %318 = vmatpush.msra.mxu0 %v299_v18  ;;  %v290_v47 = vld [vmem:[%s2632_s2] sm:$0xff]  ;;  %v1979_v49 = vld [vmem:[#allocation8 + $0xa8] sm:$0xff]  ;;  %v1987_v55 = vld [vmem:[#allocation8 + $0x90] sm:$0xff] }
  0x28   :  { %396 = vmatpush.msra.mxu2 %v1923_v28  ;;  %431 = vmatpush.msra.mxu3 %v1932_v31  ;;  %v230_v48 = vld [vmem:[#allocation8 + $0x20] sm:$0xff]  ;;  %v229_v50 = vld [vmem:[#allocation8 + $0x18] sm:$0xff]  ;;  %v227_v54 = vld [vmem:[#allocation8 + $0x8] sm:$0xff] }
  0x29   :  { %319 = vmatpush.msra.mxu0 %v298_v22  ;;  %v1981_v51 = vld [vmem:[#allocation8 + $0xa0] sm:$0xff]  ;;  %v1984_v53 = vld [vmem:[#allocation8 + $0x98] sm:$0xff]  ;;  %v1991_v57 = vld [vmem:[#allocation8 + $0x88] sm:$0xff] }
  0x2a   :  { %962 = vperm.xlu0 %1487, %v953_v29   ;;  %397 = vmatpush.msra.mxu2 %v1930_v30  ;;  %v226_v56 = vld [vmem:[#allocation8] sm:$0xff]  ;;  %v1490_v4 = vld [vmem:[#allocation2] ss:$0 sm:$0xff]  ;;  %v333_v8 = vld [vmem:[%s2633_s3 + $0x10] sm:$0xff] }
  0x2b   :  { %320 = vmatpush.msra.mxu0 %v297_v25  ;;  %965 = vperm.xlu1 %1488, %v954_v33   ;;  %v1994_v58 = vld [vmem:[#allocation8 + $0x80] sm:$0xff]  ;;  %v2057_v9 = vld [vmem:[#allocation8 + $0x1f8] sm:$0xff]  ;;  %v2064_v14 = vld [vmem:[#allocation8 + $0x1f0] sm:$0xff] }
  0x2c   :  { %398 = vmatpush.msra.mxu2 %v1941_v34  ;;  %432 = vmatpush.msra.mxu3 %v1943_v35  ;;  %v2070_v15 = vld [vmem:[#allocation8 + $0x170] sm:$0xff]  ;;  %v2079_v18 = vld [vmem:[#allocation8 + $0x168] sm:$0xff]  ;;  %v2083_v19 = vld [vmem:[#allocation8 + $0x1e0] sm:$0xff] }
  0x2d   :  { %321 = vmatpush.msra.mxu0 %v296_v27  ;;  %959 = vperm.xlu2 %1489, %v952_v37   ;;  %v2087_v20 = vld [vmem:[#allocation8 + $0x160] sm:$0xff]  ;;  %v2093_v22 = vld [vmem:[#allocation8 + $0x1d8] sm:$0xff]  ;;  %v2102_v27 = vld [vmem:[#allocation8 + $0x1d0] sm:$0xff] }
  0x2e   :  { %399 = vmatpush.msra.mxu2 %v1953_v38  ;;  %433 = vmatpush.msra.mxu3 %v1955_v39  ;;  %v332_v25 = vld [vmem:[%s2633_s3 + $0x8] sm:$0xff]  ;;  %v2128_v37 = vld [vmem:[#allocation8 + $0x138] sm:$0xff] }
  0x2f   :  { %322 = vmatpush.msra.mxu0 %v295_v32  ;;  %v2109_v29 = vld [vmem:[#allocation8 + $0x1c8] sm:$0xff]  ;;  %v2116_v32 = vld [vmem:[#allocation8 + $0x1c0] sm:$0xff] }
  0x30   :  { %400 = vmatpush.msra.mxu2 %v232_v41  ;;  %434 = vmatpush.msra.mxu3 %v1962_v42  ;;  %v2119_v33 = vld [vmem:[#allocation8 + $0x140] sm:$0xff] }
  0x31   :  { %323 = vmatpush.msra.mxu0 %v294_v36  ;;  %v2125_v36 = vld [vmem:[#allocation8 + $0x1b8] sm:$0xff] }
  0x32   :  { %401 = vmatpush.msra.mxu2 %v231_v44  ;;  %435 = vmatpush.msra.mxu3 %v1969_v45 }
  0x33   :  { %324 = vmatpush.msra.mxu0 %v293_v40  ;;  %v2135_v40 = vld [vmem:[#allocation8 + $0x130] sm:$0xff] }
  0x34   :  { %402 = vmatpush.msra.mxu2 %v230_v48  ;;  %436 = vmatpush.msra.mxu3 %v1979_v49 }
  0x35   :  { %325 = vmatpush.msra.mxu0 %v292_v43  ;;  %v2141_v43 = vld [vmem:[#allocation8 + $0x128] sm:$0xff] }
  0x36   :  { %403 = vmatpush.msra.mxu2 %v229_v50  ;;  %437 = vmatpush.msra.mxu3 %v1981_v51 }
  0x37   :  { %326 = vmatpush.msra.mxu0 %v291_v46  ;;  %v2147_v46 = vld [vmem:[#allocation8 + $0x120] sm:$0xff] }
  0x38   :  { %327 = vmatmul.f32.vlgmr.msra.gmra.mxu0 %v290_v47  ;;  %404 = vmatpush.msra.mxu2 %v228_v52  ;;  %v336_v47 = vld [vmem:[%s2633_s3 + $0x28] sm:$0xff] }
  0x39   :  { %438 = vmatpush.msra.mxu3 %v1984_v53 }
  0x3a   :  { %405 = vmatpush.msra.mxu2 %v227_v54 }
  0x3b   :  { %439 = vmatpush.msra.mxu3 %v1987_v55 }
  0x3c   :  { %406 = vmatpush.msra.mxu2 %v226_v56 }
  0x3d   :  { %440 = vmatpush.msra.mxu3 %v1991_v57 }
  0x3f   :  { %441 = vmatpush.msra.mxu3 %v1994_v58 }
  0x41   :  { %662 = vmatpush.xpose.msrb.mxu3 %v1871_v10  ;;  %v2059_v10 = vld [vmem:[#allocation8 + $0x178] sm:$0xff] }
  0x45   :  { %663 = vmatpush.xpose.msrb.mxu3 %v1873_v11  ;;  %v331_v11 = vld [vmem:[%s2633_s3] sm:$0xff] }
  0x49   :  { %664 = vmatpush.xpose.msrb.mxu3 %v1888_v16  ;;  %v2075_v16 = vld [vmem:[#allocation8 + $0x1e8] sm:$0xff] }
  0x4d   :  { %665 = vmatpush.xpose.msrb.mxu3 %v1902_v21  ;;  %v334_v21 = vld [vmem:[%s2633_s3 + $0x18] sm:$0xff] }
  0x51   :  { %666 = vmatpush.xpose.msrb.mxu3 %v1911_v24  ;;  %v2096_v24 = vld [vmem:[#allocation8 + $0x158] sm:$0xff] }
  0x55   :  { %667 = vmatpush.xpose.msrb.mxu3 %v1923_v28  ;;  %v2106_v28 = vld [vmem:[#allocation8 + $0x150] sm:$0xff] }
  0x59   :  { %668 = vmatpush.xpose.msrb.mxu3 %v1930_v30  ;;  %v2113_v30 = vld [vmem:[#allocation8 + $0x148] sm:$0xff] }
  0x5d   :  { %669 = vmatpush.xpose.msrb.mxu3 %v1941_v34  ;;  %v335_v34 = vld [vmem:[%s2633_s3 + $0x20] sm:$0xff] }
  0x61   :  { %670 = vmatpush.xpose.msrb.mxu3 %v1953_v38  ;;  %v2131_v38 = vld [vmem:[#allocation8 + $0x1b0] sm:$0xff] }
  0x65   :  { %671 = vmatpush.xpose.msrb.mxu3 %v232_v41  ;;  %v2138_v41 = vld [vmem:[#allocation8 + $0x1a8] sm:$0xff] }
  0x69   :  { %672 = vmatpush.xpose.msrb.mxu3 %v231_v44  ;;  %v2144_v44 = vld [vmem:[#allocation8 + $0x1a0] sm:$0xff] }
  0x6d   :  { %673 = vmatpush.xpose.msrb.mxu3 %v230_v48  ;;  %v2153_v48 = vld [vmem:[#allocation8 + $0x198] sm:$0xff] }
  0x71   :  { %674 = vmatpush.xpose.msrb.mxu3 %v229_v50  ;;  %v2156_v50 = vld [vmem:[#allocation8 + $0x118] sm:$0xff] }
  0x75   :  { %675 = vmatpush.xpose.msrb.mxu3 %v228_v52  ;;  %v2044_v3 = vpop.permute.xlu2 %149  ;;  %v2159_v52 = vld [vmem:[#allocation8 + $0x190] sm:$0xff] }
  0x76   :  { %vm170_vm8 = vcmp.eq.s32.totalorder %v2004_v60, %v2044_v3  ;;  %vm171_vm9 = vcmp.eq.s32.totalorder %v2008_v61, %v2044_v3 }
  0x79   :  { %676 = vmatpush.xpose.msrb.mxu3 %v227_v54  ;;  %v2163_v54 = vld [vmem:[#allocation8 + $0x110] sm:$0xff] }
  0x7d   :  { %677 = vmatpush.xpose.msrb.mxu3 %v226_v56  ;;  %v2052_v6 = vpop.permute.xlu2 %152  ;;  %v2166_v56 = vld [vmem:[#allocation8 + $0x188] sm:$0xff] }
  0x7e   :  { %vm174_vm11 = vcmp.eq.s32.totalorder %v2004_v60, %v2052_v6  ;;  %vm175_vm12 = vcmp.eq.s32.totalorder %v2008_v61, %v2052_v6 }
  0x8c   :  { %v2010_v62 = vpop.permute.xlu0 %137  ;;  %v2028_v1 = vpop.permute.xlu1 %143 }
  0x8d   :  { %vm154_vm0 = vcmp.eq.s32.totalorder %v2004_v60, %v2010_v62  ;;  %vm155_vm1 = vcmp.eq.s32.totalorder %v2008_v61, %v2010_v62  ;;  %vm162_vm4 = vcmp.eq.s32.totalorder %v2004_v60, %v2028_v1  ;;  %vm163_vm5 = vcmp.eq.s32.totalorder %v2008_v61, %v2028_v1 }
  0x8e   :  { %1435 = vmatmul.msk.f32.vlgmr.msra.gmra.mxu2 %vm154_vm0, %v1743_v63  ;;  %1441 = vmatmul.msk.f32.vlgmr.msra.gmra.mxu3 %vm155_vm1, %v1743_v63 }
  0x94   :  { %v2020_v0 = vpop.permute.xlu0 %140  ;;  %v2036_v2 = vpop.permute.xlu1 %146 }
  0x95   :  { %vm158_vm2 = vcmp.eq.s32.totalorder %v2004_v60, %v2020_v0  ;;  %vm159_vm3 = vcmp.eq.s32.totalorder %v2008_v61, %v2020_v0  ;;  %vm166_vm6 = vcmp.eq.s32.totalorder %v2004_v60, %v2036_v2  ;;  %vm167_vm7 = vcmp.eq.s32.totalorder %v2008_v61, %v2036_v2 }
  0x96   :  { %1436 = vmatmul.msk.f32.gmra.mxu2 %vm158_vm2, %v1743_v63  ;;  %1442 = vmatmul.msk.f32.gmra.mxu3 %vm159_vm3, %v1743_v63 }
  0x9e   :  { %1437 = vmatmul.msk.f32.gmra.mxu2 %vm162_vm4, %v1743_v63  ;;  %1443 = vmatmul.msk.f32.gmra.mxu3 %vm163_vm5, %v1743_v63 }
  0xa6   :  { %1438 = vmatmul.msk.f32.gmra.mxu2 %vm166_vm6, %v1743_v63  ;;  %1444 = vmatmul.msk.f32.gmra.mxu3 %vm167_vm7, %v1743_v63 }
  0xae   :  { %1439 = vmatmul.msk.f32.gmra.mxu2 %vm170_vm8, %v1743_v63  ;;  %1445 = vmatmul.msk.f32.gmra.mxu3 %vm171_vm9, %v1743_v63  ;;  %vm1307_vm9 = vcmp.lt.s32.totalorder %v2004_v60, 4 }
  0xb5   :  { %v328_v5 = vpop.f32.mrf.mxu0 }
  0xb6   :  { %v329_v7 = vadd.f32 %v1490_v4, %v328_v5  ;;  %1440 = vmatmul.msk.f32.gmra.mxu2 %vm174_vm11, %v1743_v63  ;;  %1446 = vmatmul.msk.f32.gmra.mxu3 %vm175_vm12, %v1743_v63  ;;  %v2169_v4 = vld [vmem:[#allocation8 + $0x108] sm:$0xff]  ;;  %v2172_v5 = vadd.s32 384, %v2004_v60 }
  0xb8   :  { %371 = vmatpush.msrb.mxu0 %v329_v7  ;;  %1465 = vmatpush.msra.mxu1 %v329_v7  ;;  %v2175_v7 = vld [vmem:[#allocation8 + $0x180] sm:$0xff]  ;;  %vm157_vm13 = vcmp.eq.s32.totalorder %v2172_v5, %v2010_v62  ;;  %vm161_vm15 = vcmp.eq.s32.totalorder %v2172_v5, %v2020_v0  ;;  %vm165_vm1 = vcmp.eq.s32.totalorder %v2172_v5, %v2028_v1 }
  0xb9   :  { %1431 = vmatmul.msk.f32.vlgmr.msra.gmra.mxu1 %vm337_vm10, %v333_v8  ;;  %1429 = vmatmul.msk.f32.vlgmr.msrb.gmra.mxu0 %vm337_vm10, %v331_v11  ;;  %v2178_v8 = vadd.s32 256, %v2004_v60  ;;  %v2181_v11 = vld [vmem:[#allocation8 + $0x100] sm:$0xff]  ;;  %vm169_vm3 = vcmp.eq.s32.totalorder %v2172_v5, %v2036_v2  ;;  %vm173_vm5 = vcmp.eq.s32.totalorder %v2172_v5, %v2044_v3  ;;  %vm177_vm7 = vcmp.eq.s32.totalorder %v2172_v5, %v2052_v6 }
  0xba   :  { %496 = vmatpush.msra.mxu0 %v2057_v9  ;;  %461 = vmatpush.msrb.mxu1 %v2059_v10 }
  0xbb   :  { %vm156_vm14 = vcmp.eq.s32.totalorder %v2178_v8, %v2010_v62  ;;  %vm160_vm0 = vcmp.eq.s32.totalorder %v2178_v8, %v2020_v0  ;;  %vm164_vm2 = vcmp.eq.s32.totalorder %v2178_v8, %v2028_v1  ;;  %vm168_vm4 = vcmp.eq.s32.totalorder %v2178_v8, %v2036_v2  ;;  %v531_v62 = vld [vmem:[%s2637_s7] sm:$0xff] }
  0xbc   :  { %497 = vmatpush.msra.mxu0 %v2064_v14  ;;  %462 = vmatpush.msrb.mxu1 %v2070_v15  ;;  %vm172_vm6 = vcmp.eq.s32.totalorder %v2178_v8, %v2044_v3  ;;  %vm176_vm8 = vcmp.eq.s32.totalorder %v2178_v8, %v2052_v6 }
  0xbe   :  { %498 = vmatpush.msra.mxu0 %v2075_v16  ;;  %463 = vmatpush.msrb.mxu1 %v2079_v18 }
  0xc0   :  { %499 = vmatpush.msra.mxu0 %v2083_v19  ;;  %464 = vmatpush.msrb.mxu1 %v2087_v20 }
  0xc1   :  { %1432 = vmatmul.msk.f32.gmra.mxu1 %vm337_vm10, %v334_v21  ;;  %1430 = vmatmul.msk.f32.gmra.mxu0 %vm337_vm10, %v332_v25 }
  0xc2   :  { %500 = vmatpush.msra.mxu0 %v2093_v22  ;;  %465 = vmatpush.msrb.mxu1 %v2096_v24 }
  0xc4   :  { %501 = vmatpush.msra.mxu0 %v2102_v27  ;;  %466 = vmatpush.msrb.mxu1 %v2106_v28 }
  0xc6   :  { %502 = vmatpush.msra.mxu0 %v2109_v29  ;;  %467 = vmatpush.msrb.mxu1 %v2113_v30 }
  0xc8   :  { %503 = vmatpush.msra.mxu0 %v2116_v32  ;;  %468 = vmatpush.msrb.mxu1 %v2119_v33 }
  0xc9   :  { %1433 = vmatmul.msk.f32.gmra.mxu1 %vm337_vm10, %v335_v34 }
  0xca   :  { %504 = vmatpush.msra.mxu0 %v2125_v36  ;;  %469 = vmatpush.msrb.mxu1 %v2128_v37 }
  0xcc   :  { %505 = vmatpush.msra.mxu0 %v2131_v38  ;;  %470 = vmatpush.msrb.mxu1 %v2135_v40 }
  0xce   :  { %506 = vmatpush.msra.mxu0 %v2138_v41  ;;  %471 = vmatpush.msrb.mxu1 %v2141_v43 }
  0xd0   :  { %507 = vmatpush.msra.mxu0 %v2144_v44  ;;  %472 = vmatpush.msrb.mxu1 %v2147_v46 }
  0xd1   :  { %1434 = vmatmul.msk.f32.gmra.mxu1 %vm337_vm10, %v336_v47 }
  0xd2   :  { %508 = vmatpush.msra.mxu0 %v2153_v48  ;;  %473 = vmatpush.msrb.mxu1 %v2156_v50 }
  0xd4   :  { %509 = vmatpush.msra.mxu0 %v2159_v52  ;;  %474 = vmatpush.msrb.mxu1 %v2163_v54 }
  0xd6   :  { %510 = vmatpush.msra.mxu0 %v2166_v56  ;;  %475 = vmatpush.msrb.mxu1 %v2169_v4 }
  0xd8   :  { %511 = vmatpush.msra.mxu0 %v2175_v7  ;;  %476 = vmatpush.msrb.mxu1 %v2181_v11 }
  0xd9   :  { %1453 = vmatmul.msk.f32.vlgmr.msra.gmra.mxu0 %vm157_vm13, %v1743_v63  ;;  %1447 = vmatmul.msk.f32.vlgmr.msrb.gmra.mxu1 %vm156_vm14, %v1743_v63 }
  0xda   :  { %732 = vmatpush.xpose.msrb.mxu0 %v2059_v10  ;;  %697 = vmatpush.xpose.msra.mxu1 %v1876_v12  ;;  %v546_v12 = vld [vmem:[%s2637_s7 + $0x78] sm:$0xff] }
  0xdb   :  { %551 = vmatpush.msrb.mxu2 %v546_v12 }
  0xde   :  { %733 = vmatpush.xpose.msrb.mxu0 %v2070_v15  ;;  %698 = vmatpush.xpose.msra.mxu1 %v1878_v13  ;;  %v545_v13 = vld [vmem:[%s2637_s7 + $0x70] sm:$0xff] }
  0xdf   :  { %552 = vmatpush.msrb.mxu2 %v545_v13 }
  0xe1   :  { %1454 = vmatmul.msk.f32.gmra.mxu0 %vm161_vm15, %v1743_v63  ;;  %1448 = vmatmul.msk.f32.gmra.mxu1 %vm160_vm0, %v1743_v63 }
  0xe2   :  { %734 = vmatpush.xpose.msrb.mxu0 %v2079_v18  ;;  %699 = vmatpush.xpose.msra.mxu1 %v1890_v17  ;;  %v544_v17 = vld [vmem:[%s2637_s7 + $0x68] sm:$0xff] }
  0xe3   :  { %553 = vmatpush.msrb.mxu2 %v544_v17 }
  0xe6   :  { %735 = vmatpush.xpose.msrb.mxu0 %v2087_v20  ;;  %700 = vmatpush.xpose.msra.mxu1 %v1909_v23  ;;  %v543_v23 = vld [vmem:[%s2637_s7 + $0x60] sm:$0xff] }
  0xe7   :  { %554 = vmatpush.msrb.mxu2 %v543_v23 }
  0xe9   :  { %1455 = vmatmul.msk.f32.gmra.mxu0 %vm165_vm1, %v1743_v63  ;;  %1449 = vmatmul.msk.f32.gmra.mxu1 %vm164_vm2, %v1743_v63 }
  0xea   :  { %736 = vmatpush.xpose.msrb.mxu0 %v2096_v24  ;;  %701 = vmatpush.xpose.msra.mxu1 %v1917_v26  ;;  %v542_v26 = vld [vmem:[%s2637_s7 + $0x58] sm:$0xff] }
  0xeb   :  { %555 = vmatpush.msrb.mxu2 %v542_v26 }
  0xee   :  { %737 = vmatpush.xpose.msrb.mxu0 %v2106_v28  ;;  %702 = vmatpush.xpose.msra.mxu1 %v1932_v31  ;;  %v541_v31 = vld [vmem:[%s2637_s7 + $0x50] sm:$0xff] }
  0xef   :  { %556 = vmatpush.msrb.mxu2 %v541_v31 }
  0xf1   :  { %1456 = vmatmul.msk.f32.gmra.mxu0 %vm169_vm3, %v1743_v63  ;;  %1450 = vmatmul.msk.f32.gmra.mxu1 %vm168_vm4, %v1743_v63 }
  0xf2   :  { %738 = vmatpush.xpose.msrb.mxu0 %v2113_v30  ;;  %703 = vmatpush.xpose.msra.mxu1 %v1943_v35  ;;  %v540_v35 = vld [vmem:[%s2637_s7 + $0x48] sm:$0xff] }
  0xf3   :  { %557 = vmatpush.msrb.mxu2 %v540_v35 }
  0xf6   :  { %739 = vmatpush.xpose.msrb.mxu0 %v2119_v33  ;;  %704 = vmatpush.xpose.msra.mxu1 %v1955_v39  ;;  %v539_v39 = vld [vmem:[%s2637_s7 + $0x40] sm:$0xff] }
  0xf7   :  { %558 = vmatpush.msrb.mxu2 %v539_v39 }
  0xf9   :  { %1457 = vmatmul.msk.f32.gmra.mxu0 %vm173_vm5, %v1743_v63  ;;  %1451 = vmatmul.msk.f32.gmra.mxu1 %vm172_vm6, %v1743_v63 }
  0xfa   :  { %740 = vmatpush.xpose.msrb.mxu0 %v2128_v37  ;;  %705 = vmatpush.xpose.msra.mxu1 %v1962_v42  ;;  %v538_v42 = vld [vmem:[%s2637_s7 + $0x38] sm:$0xff] }
  0xfb   :  { %559 = vmatpush.msrb.mxu2 %v538_v42 }
  0xfe   :  { %741 = vmatpush.xpose.msrb.mxu0 %v2135_v40  ;;  %706 = vmatpush.xpose.msra.mxu1 %v1969_v45  ;;  %v537_v45 = vld [vmem:[%s2637_s7 + $0x30] sm:$0xff] }
  0xff   :  { %560 = vmatpush.msrb.mxu2 %v537_v45 }
 0x101   :  { %1458 = vmatmul.msk.f32.gmra.mxu0 %vm177_vm7, %v1743_v63  ;;  %1452 = vmatmul.msk.f32.gmra.mxu1 %vm176_vm8, %v1743_v63 }
 0x102   :  { %707 = vmatpush.xpose.msra.mxu1 %v1979_v49  ;;  %742 = vmatpush.xpose.msrb.mxu0 %v2141_v43  ;;  %v536_v49 = vld [vmem:[%s2637_s7 + $0x28] sm:$0xff] }
 0x103   :  { %561 = vmatpush.msrb.mxu2 %v536_v49 }
 0x106   :  { %708 = vmatpush.xpose.msra.mxu1 %v1981_v51  ;;  %743 = vmatpush.xpose.msrb.mxu0 %v2147_v46  ;;  %v535_v51 = vld [vmem:[%s2637_s7 + $0x20] sm:$0xff] }
 0x107   :  { %562 = vmatpush.msrb.mxu2 %v535_v51 }
 0x10a   :  { %709 = vmatpush.xpose.msra.mxu1 %v1984_v53  ;;  %744 = vmatpush.xpose.msrb.mxu0 %v2156_v50  ;;  %v534_v53 = vld [vmem:[%s2637_s7 + $0x18] sm:$0xff] }
 0x10b   :  { %563 = vmatpush.msrb.mxu2 %v534_v53 }
 0x10e   :  { %710 = vmatpush.xpose.msra.mxu1 %v1987_v55  ;;  %745 = vmatpush.xpose.msrb.mxu0 %v2163_v54  ;;  %v533_v55 = vld [vmem:[%s2637_s7 + $0x10] sm:$0xff] }
 0x10f   :  { %564 = vmatpush.msrb.mxu2 %v533_v55  ;;  %v1141_v55 = vld [vmem:[#allocation9 + $0x78] sm:$0xff] }
 0x110   :  { %1146 = vmatpush.msra.mxu3 %v1141_v55 }
 0x111   :  { %v408_v1 = vpop.f32.mrf.mxu2  ;;  %v443_v3 = vpop.f32.mrf.mxu3 }
 0x112   :  { %711 = vmatpush.xpose.msra.mxu1 %v1991_v57  ;;  %746 = vmatpush.xpose.msrb.mxu0 %v2169_v4  ;;  %v532_v57 = vld [vmem:[%s2637_s7 + $0x8] sm:$0xff] }
 0x113   :  { %565 = vmatpush.msrb.mxu2 %v532_v57  ;;  %v1140_v57 = vld [vmem:[#allocation9 + $0x70] sm:$0xff] }
 0x114   :  { %1147 = vmatpush.msra.mxu3 %v1140_v57 }
 0x115   :  { %566 = vmatpush.msrb.mxu2 %v531_v62 }
 0x116   :  { %712 = vmatpush.xpose.msra.mxu1 %v1994_v58  ;;  %747 = vmatpush.xpose.msrb.mxu0 %v2181_v11 }
 0x117   :  { %767 = vmatpush.xpose.msra.mxu2 %v2057_v9 }
 0x119   :  { %v411_v10 = vpop.f32.mrf.mxu2  ;;  %v446_v9 = vpop.f32.mrf.mxu3 }
 0x11b   :  { %768 = vmatpush.xpose.msra.mxu2 %v2064_v14 }
 0x11f   :  { %769 = vmatpush.xpose.msra.mxu2 %v2075_v16 }
 0x121   :  { %v414_v24 = vpop.f32.mrf.mxu2  ;;  %v449_v28 = vpop.f32.mrf.mxu3 }
 0x123   :  { %770 = vmatpush.xpose.msra.mxu2 %v2083_v19 }
 0x127   :  { %771 = vmatpush.xpose.msra.mxu2 %v2093_v22 }
 0x129   :  { %v417_v34 = vpop.f32.mrf.mxu2  ;;  %v452_v43 = vpop.f32.mrf.mxu3 }
 0x12b   :  { %772 = vmatpush.xpose.msra.mxu2 %v2102_v27 }
 0x12f   :  { %773 = vmatpush.xpose.msra.mxu2 %v2109_v29 }
 0x131   :  { %v420_v54 = vpop.f32.mrf.mxu2  ;;  %v455_v13 = vpop.f32.mrf.mxu3 }
 0x133   :  { %774 = vmatpush.xpose.msra.mxu2 %v2116_v32 }
 0x136   :  { %v379_v58 = vpop.f32.mrf.mxu1  ;;  %v373_v0 = vpop.f32.mrf.mxu0 }
 0x137   :  { %v409_v18 = vadd.f32 %v408_v1, %v373_v0  ;;  %775 = vmatpush.xpose.msra.mxu2 %v2125_v36  ;;  %v415_v29 = vadd.f32 %v414_v24, %v379_v58  ;;  %v1139_v58 = vld [vmem:[#allocation9 + $0x68] sm:$0xff]  ;;  %v1137_v0 = vld [vmem:[#allocation9 + $0x58] sm:$0xff]  ;;  %v1136_v1 = vld [vmem:[#allocation9 + $0x50] sm:$0xff] }
 0x138   :  { %1148 = vmatpush.msra.mxu3 %v1139_v58  ;;  %v1131_v24 = vld [vmem:[#allocation9 + $0x28] sm:$0xff] }
 0x139   :  { %v444_v20 = vadd.f32 %v443_v3, %v409_v18  ;;  %v450_v40 = vadd.f32 %v449_v28, %v415_v29  ;;  %v458_v42 = vpop.f32.mrf.mxu3  ;;  %v1133_v18 = vld [vmem:[#allocation9 + $0x38] sm:$0xff]  ;;  %v1126_v29 = vld [vmem:[#allocation9] sm:$0xff] }
 0x13b   :  { %776 = vmatpush.xpose.msra.mxu2 %v2131_v38 }
 0x13e   :  { %v382_v63 = vpop.f32.mrf.mxu1  ;;  %v376_v6 = vpop.f32.mrf.mxu0 }
 0x13f   :  { %v412_v19 = vadd.f32 %v411_v10, %v376_v6  ;;  %777 = vmatpush.xpose.msra.mxu2 %v2138_v41  ;;  %v418_v36 = vadd.f32 %v417_v34, %v382_v63  ;;  %v1138_v63 = vld [vmem:[#allocation9 + $0x60] sm:$0xff] }
 0x140   :  { %1149 = vmatpush.msra.mxu3 %v1138_v63 }
 0x141   :  { %v447_v30 = vadd.f32 %v446_v9, %v412_v19  ;;  %v453_v38 = vadd.f32 %v452_v43, %v418_v36  ;;  %v1132_v9 = vld [vmem:[#allocation9 + $0x30] sm:$0xff]  ;;  %v1129_v19 = vld [vmem:[#allocation9 + $0x18] sm:$0xff] }
 0x142   :  { %1150 = vmatpush.msra.mxu3 %v1137_v0  ;;  %v1187_v36 = vld [vmem:[%s2634_s4] sm:$0xff] }
 0x143   :  { %778 = vmatpush.xpose.msra.mxu2 %v2144_v44  ;;  %v423_v44 = vpop.f32.mrf.mxu2 }
 0x144   :  { %1151 = vmatpush.msra.mxu3 %v1136_v1 }
 0x146   :  { %v385_v2 = vpop.f32.mrf.mxu1 }
 0x147   :  { %779 = vmatpush.xpose.msra.mxu2 %v2153_v48  ;;  %v421_v41 = vadd.f32 %v420_v54, %v385_v2  ;;  %v1135_v2 = vld [vmem:[#allocation9 + $0x48] sm:$0xff] }
 0x148   :  { %1152 = vmatpush.msra.mxu3 %v1135_v2  ;;  %v1189_v54 = vld [vmem:[%s2634_s4 + $0x10] sm:$0xff] }
 0x149   :  { %v456_v23 = vadd.f32 %v455_v13, %v421_v41 }
 0x14b   :  { %780 = vmatpush.xpose.msra.mxu2 %v2159_v52 }
 0x14e   :  { %v388_v15 = vpop.f32.mrf.mxu1 }
 0x14f   :  { %781 = vmatpush.xpose.msra.mxu2 %v2166_v56  ;;  %v424_v48 = vadd.f32 %v423_v44, %v388_v15  ;;  %v2318_v56 = vld [vmem:[#allocation6] ss:$0 sm:$0xff]  ;;  %v1134_v15 = vld [vmem:[#allocation9 + $0x40] sm:$0xff] }
 0x150   :  { %1153 = vmatpush.msra.mxu3 %v1134_v15 }
 0x151   :  { %v459_v45 = vadd.f32 %v458_v42, %v424_v48 }
 0x152   :  { %1154 = vmatpush.msra.mxu3 %v1133_v18 }
 0x153   :  { %782 = vmatpush.xpose.msra.mxu2 %v2175_v7 }
 0x154   :  { %1155 = vmatpush.msra.mxu3 %v1132_v9 }
 0x156   :  { %v513_v14 = vpop.f32.mrf.mxu0  ;;  %v478_v21 = vpop.f32.mrf.mxu1  ;;  %1156 = vmatpush.msra.mxu3 %v1131_v24 }
 0x157   :  { %v479_v16 = vadd.f32 %v478_v21, %v444_v20 }
 0x159   :  { %v514_v25 = vadd.f32 %v513_v14, %v479_v16  ;;  %v1130_v16 = vld [vmem:[#allocation9 + $0x20] sm:$0xff] }
 0x15a   :  { %1157 = vmatpush.msra.mxu3 %v1130_v16 }
 0x15b   :  { %567 = vmatmul.f32.vlgmr.msrb.gmra.mxu2 %v514_v25 }
 0x15c   :  { %1158 = vmatpush.msra.mxu3 %v1129_v19 }
 0x15e   :  { %v516_v22 = vpop.f32.mrf.mxu0  ;;  %v481_v27 = vpop.f32.mrf.mxu1 }
 0x15f   :  { %v482_v33 = vadd.f32 %v481_v27, %v447_v30  ;;  %v1128_v30 = vld [vmem:[#allocation9 + $0x10] sm:$0xff]  ;;  %v1193_v27 = vld [vmem:[%s2632_s2] sm:$0xff] }
 0x160   :  { %1159 = vmatpush.msra.mxu3 %v1128_v30  ;;  %1227 = vmatpush.msrb.mxu1 %v1193_v27  ;;  %v1492_v27 = vld [vmem:[#allocation11] ss:$0 sm:$0xff] }
 0x161   :  { %v517_v37 = vadd.f32 %v516_v22, %v482_v33  ;;  %v1127_v33 = vld [vmem:[#allocation9 + $0x8] sm:$0xff] }
 0x162   :  { %1160 = vmatpush.msra.mxu3 %v1127_v33 }
 0x163   :  { %570 = vmatmul.f32.gmra.mxu2 %v517_v37 }
 0x164   :  { %1161 = vmatpush.msra.mxu3 %v1126_v29 }
 0x166   :  { %v519_v32 = vpop.f32.mrf.mxu0  ;;  %v484_v46 = vpop.f32.mrf.mxu1 }
 0x167   :  { %v485_v47 = vadd.f32 %v484_v46, %v450_v40 }
 0x169   :  { %v520_v50 = vadd.f32 %v519_v32, %v485_v47 }
 0x16b   :  { %573 = vmatmul.f32.gmra.mxu2 %v520_v50  ;;  %v1188_v50 = vld [vmem:[%s2634_s4 + $0x8] sm:$0xff] }
 0x16e   :  { %v522_v4 = vpop.f32.mrf.mxu0  ;;  %v487_v11 = vpop.f32.mrf.mxu1 }
 0x16f   :  { %v488_v12 = vadd.f32 %v487_v11, %v453_v38  ;;  %v1190_v38 = vld [vmem:[%s2634_s4 + $0x18] sm:$0xff]  ;;  %v1192_v11 = vld [vmem:[%s2634_s4 + $0x28] sm:$0xff] }
 0x171   :  { %v523_v17 = vadd.f32 %v522_v4, %v488_v12  ;;  %v1191_v4 = vld [vmem:[%s2634_s4 + $0x20] sm:$0xff] }
 0x173   :  { %576 = vmatmul.f32.gmra.mxu2 %v523_v17 }
 0x176   :  { %v525_v26 = vpop.f32.mrf.mxu0  ;;  %v490_v31 = vpop.f32.mrf.mxu1 }
 0x177   :  { %v491_v35 = vadd.f32 %v490_v31, %v456_v23 }
 0x179   :  { %v526_v39 = vadd.f32 %v525_v26, %v491_v35 }
 0x17b   :  { %579 = vmatmul.f32.gmra.mxu2 %v526_v39 }
 0x17e   :  { %v493_v49 = vpop.f32.mrf.mxu1  ;;  %v528_v52 = vpop.f32.mrf.mxu0 }
 0x17f   :  { %v494_v51 = vadd.f32 %v493_v49, %v459_v45 }
 0x181   :  { %v529_v53 = vadd.f32 %v528_v52, %v494_v51 }
 0x183   :  { %582 = vmatmul.f32.gmra.mxu2 %v529_v53 }
 0x1de   :  { %v568_v62 = vpop.f32.mrf.mxu2 }
 0x1df   :  { %v569_v7 = vadd.f32 %v2318_v56, %v568_v62 }
 0x1e1   :  { %1493 = vtanh.f32 %v569_v7 }
 0x1e6   :  { %v571_v3 = vpop.f32.mrf.mxu2 }
 0x1e7   :  { %v2321_v6 = vpop.eup %1493  ;;  %v572_v10 = vadd.f32 %v2318_v56, %v571_v3 }
 0x1e8   :  { %592 = vst [vmem:[#allocation12] sm:$0xff] %v2321_v6  ;;  %678 = vmatmul.f32.vlgmr.msrb.gmra.mxu3 %v2321_v6  ;;  %713 = vmatmul.f32.vlgmr.msra.gmra.mxu1 %v2321_v6 }
 0x1e9   :  { %1495 = vtanh.f32 %v572_v10  ;;  %748 = vmatmul.f32.vlgmr.msrb.gmra.mxu0 %v2321_v6  ;;  %783 = vmatmul.f32.vlgmr.msra.gmra.mxu2 %v2321_v6 }
 0x1ee   :  { %v574_v14 = vpop.f32.mrf.mxu2 }
 0x1ef   :  { %v1496_v20 = vpop.eup %1495  ;;  %v575_v21 = vadd.f32 %v2318_v56, %v574_v14 }
 0x1f0   :  { %593 = vst [vmem:[#allocation12 + $0x8] sm:$0xff] %v1496_v20  ;;  %681 = vmatmul.f32.gmra.mxu3 %v1496_v20  ;;  %716 = vmatmul.f32.gmra.mxu1 %v1496_v20 }
 0x1f1   :  { %1497 = vtanh.f32 %v575_v21  ;;  %751 = vmatmul.f32.gmra.mxu0 %v1496_v20  ;;  %786 = vmatmul.f32.gmra.mxu2 %v1496_v20 }
 0x1f6   :  { %v577_v25 = vpop.f32.mrf.mxu2 }
 0x1f7   :  { %v1498_v28 = vpop.eup %1497  ;;  %v578_v22 = vadd.f32 %v2318_v56, %v577_v25 }
 0x1f8   :  { %594 = vst [vmem:[#allocation12 + $0x10] sm:$0xff] %v1498_v28  ;;  %684 = vmatmul.f32.gmra.mxu3 %v1498_v28  ;;  %719 = vmatmul.f32.gmra.mxu1 %v1498_v28 }
 0x1f9   :  { %1499 = vtanh.f32 %v578_v22  ;;  %754 = vmatmul.f32.gmra.mxu0 %v1498_v28  ;;  %789 = vmatmul.f32.gmra.mxu2 %v1498_v28 }
 0x1fe   :  { %v580_v34 = vpop.f32.mrf.mxu2 }
 0x1ff   :  { %v1500_v37 = vpop.eup %1499  ;;  %v581_v40 = vadd.f32 %v2318_v56, %v580_v34 }
 0x200   :  { %595 = vst [vmem:[#allocation12 + $0x18] sm:$0xff] %v1500_v37  ;;  %687 = vmatmul.f32.gmra.mxu3 %v1500_v37  ;;  %722 = vmatmul.f32.gmra.mxu1 %v1500_v37 }
 0x201   :  { %1501 = vtanh.f32 %v581_v40  ;;  %757 = vmatmul.f32.gmra.mxu0 %v1500_v37  ;;  %792 = vmatmul.f32.gmra.mxu2 %v1500_v37 }
 0x206   :  { %v583_v32 = vpop.f32.mrf.mxu2 }
 0x207   :  { %v1502_v43 = vpop.eup %1501  ;;  %v584_v46 = vadd.f32 %v2318_v56, %v583_v32  ;;  %v955_v32 = vld [vmem:[%s2631_s1 + $0x18] sm:$0xff] }
 0x208   :  { %596 = vst [vmem:[#allocation12 + $0x20] sm:$0xff] %v1502_v43  ;;  %690 = vmatmul.f32.gmra.mxu3 %v1502_v43  ;;  %725 = vmatmul.f32.gmra.mxu1 %v1502_v43 }
 0x209   :  { %1503 = vtanh.f32 %v584_v46  ;;  %760 = vmatmul.f32.gmra.mxu0 %v1502_v43  ;;  %795 = vmatmul.f32.gmra.mxu2 %v1502_v43 }
 0x20f   :  { %v1504_v47 = vpop.eup %1503 }
 0x210   :  { %597 = vst [vmem:[#allocation12 + $0x28] sm:$0xff] %v1504_v47  ;;  %693 = vmatmul.f32.gmra.mxu3 %v1504_v47  ;;  %728 = vmatmul.f32.gmra.mxu1 %v1504_v47 }
 0x211   :  { %763 = vmatmul.f32.gmra.mxu0 %v1504_v47  ;;  %798 = vmatmul.f32.gmra.mxu2 %v1504_v47 }
 0x218   :  { %1162 = vmatmul.f32.vlgmr.msra.gmra.mxu3 %v2321_v6  ;;  %1459 = vmatmul.msk.f32.vlgmr.msrb.gmra.mxu1 %vm337_vm10, %v1187_v36 }
 0x220   :  { %1165 = vmatmul.f32.gmra.mxu3 %v1496_v20  ;;  %1460 = vmatmul.msk.f32.gmra.mxu1 %vm337_vm10, %v1188_v50 }
 0x228   :  { %1168 = vmatmul.f32.gmra.mxu3 %v1498_v28  ;;  %1461 = vmatmul.msk.f32.gmra.mxu1 %vm337_vm10, %v1189_v54 }
 0x230   :  { %1171 = vmatmul.f32.gmra.mxu3 %v1500_v37  ;;  %1462 = vmatmul.msk.f32.gmra.mxu1 %vm337_vm10, %v1190_v38  ;;  %v956_v37 = vld [vmem:[%s2631_s1 + $0x20] sm:$0xff] }
 0x238   :  { %1174 = vmatmul.f32.gmra.mxu3 %v1502_v43  ;;  %1463 = vmatmul.msk.f32.gmra.mxu1 %vm337_vm10, %v1191_v4 }
 0x240   :  { %1177 = vmatmul.f32.gmra.mxu3 %v1504_v47  ;;  %1464 = vmatmul.msk.f32.gmra.mxu1 %vm337_vm10, %v1192_v11 }
 0x265   :  { %v2361_v12 = vpop.f32.mrf.mxu1 }
 0x266   :  { %v2363_v13 = vpop.f32.mrf.mxu0 }
 0x26b   :  { %v2365_v41 = vpop.f32.mrf.mxu3 }
 0x26c   :  { %v802_v17 = vmax.f32 %v2365_v41, %v2361_v12  ;;  %v2369_v23 = vpop.f32.mrf.mxu2 }
 0x26d   :  { %v2371_v44 = vpop.f32.mrf.mxu1 }
 0x26e   :  { %v2373_v26 = vpop.f32.mrf.mxu0  ;;  %v803_v31 = vmax.f32 %v802_v17, %v2363_v13  ;;  %v957_v17 = vld [vmem:[%s2631_s1 + $0x28] sm:$0xff] }
 0x270   :  { %v804_v35 = vmax.f32 %v803_v31, %v2369_v23 }
 0x272   :  { %805 = vmax.xlane.f32.xlu0 %v804_v35 }
 0x273   :  { %v2377_v48 = vpop.f32.mrf.mxu3 }
 0x274   :  { %v807_v39 = vmax.f32 %v2377_v48, %v2371_v44  ;;  %v2381_v42 = vpop.f32.mrf.mxu2 }
 0x275   :  { %v2383_v45 = vpop.f32.mrf.mxu1 }
 0x276   :  { %v808_v49 = vmax.f32 %v807_v39, %v2373_v26  ;;  %v2386_v51 = vpop.f32.mrf.mxu0 }
 0x278   :  { %v809_v52 = vmax.f32 %v808_v49, %v2381_v42 }
 0x27a   :  { %810 = vmax.xlane.f32.xlu1 %v809_v52 }
 0x27b   :  { %v2389_v53 = vpop.f32.mrf.mxu3 }
 0x27c   :  { %v812_v55 = vmax.f32 %v2389_v53, %v2383_v45  ;;  %v2393_v56 = vpop.f32.mrf.mxu2 }
 0x27d   :  { %v2395_v57 = vpop.f32.mrf.mxu1 }
 0x27e   :  { %v813_v58 = vmax.f32 %v812_v55, %v2386_v51  ;;  %v2399_v7 = vpop.f32.mrf.mxu0 }
 0x280   :  { %v814_v62 = vmax.f32 %v813_v58, %v2393_v56 }
 0x282   :  { %815 = vmax.xlane.f32.xlu2 %v814_v62 }
 0x283   :  { %v2401_v63 = vpop.f32.mrf.mxu3 }
 0x284   :  { %v817_v0 = vmax.f32 %v2401_v63, %v2395_v57  ;;  %v2405_v1 = vpop.f32.mrf.mxu2 }
 0x285   :  { %v2407_v2 = vpop.f32.mrf.mxu1 }
 0x286   :  { %v818_v3 = vmax.f32 %v817_v0, %v2399_v7  ;;  %v2411_v10 = vpop.f32.mrf.mxu0 }
 0x288   :  { %v819_v6 = vmax.f32 %v818_v3, %v2405_v1 }
 0x28a   :  { %820 = vmax.xlane.f32.xlu2 %v819_v6 }
 0x28b   :  { %v2413_v15 = vpop.f32.mrf.mxu3 }
 0x28c   :  { %v822_v18 = vmax.f32 %v2413_v15, %v2407_v2  ;;  %v2417_v9 = vpop.f32.mrf.mxu2 }
 0x28d   :  { %v2419_v14 = vpop.f32.mrf.mxu1 }
 0x28e   :  { %v823_v20 = vmax.f32 %v822_v18, %v2411_v10  ;;  %v2427_v19 = vpop.f32.mrf.mxu0 }
 0x290   :  { %v824_v21 = vmax.f32 %v823_v20, %v2417_v9 }
 0x292   :  { %825 = vmax.xlane.f32.xlu0 %v824_v21 }
 0x293   :  { %v2423_v24 = vpop.f32.mrf.mxu3 }
 0x294   :  { %v827_v16 = vmax.f32 %v2423_v24, %v2419_v14  ;;  %v2430_v22 = vpop.f32.mrf.mxu2 }
 0x295   :  { %v1229_v25 = vpop.f32.mrf.mxu1 }
 0x296   :  { %v828_v28 = vmax.f32 %v827_v16, %v2427_v19 }
 0x298   :  { %v829_v30 = vmax.f32 %v828_v28, %v2430_v22 }
 0x29a   :  { %830 = vmax.xlane.f32.xlu1 %v829_v30 }
 0x29b   :  { %v1163_v33 = vpop.f32.mrf.mxu3 }
 0x29c   :  { %v1164_v29 = vadd.f32 %v1492_v27, %v1163_v33 }
 0x29d   :  { %v1232_v34 = vpop.f32.mrf.mxu1 }
 0x29e   :  { %1181 = vst [vmem:[%s2643_s13] sm:$0xff] %v1164_v29  ;;  %v2471_v29 = vpop.permute.xlu0 %962 }
 0x29f   :  { %vm980_vm13 = vcmp.eq.s32.totalorder %v2004_v60, %v2471_v29  ;;  %vm981_vm14 = vcmp.eq.s32.totalorder %v2008_v61, %v2471_v29  ;;  %vm982_vm0 = vcmp.eq.s32.totalorder %v2178_v8, %v2471_v29  ;;  %vm983_vm2 = vcmp.eq.s32.totalorder %v2172_v5, %v2471_v29 }
 0x2a2   :  { %971 = vperm.xlu2 %1489, %v956_v37  }
 0x2a3   :  { %v1166_v40 = vpop.f32.mrf.mxu3 }
 0x2a4   :  { %v1167_v43 = vadd.f32 %v1492_v27, %v1166_v40 }
 0x2a5   :  { %v1235_v46 = vpop.f32.mrf.mxu1 }
 0x2a6   :  { %1182 = vst [vmem:[%s2643_s13 + $0x8] sm:$0xff] %v1167_v43  ;;  %v1248_v47 = vsub.f32 %v1167_v43, %v1232_v34  ;;  %968 = vperm.xlu0 %1487, %v955_v32   ;;  %v2473_v34 = vpop.permute.xlu1 %965 }
 0x2a7   :  { %vm985_vm1 = vcmp.eq.s32.totalorder %v2008_v61, %v2473_v34  ;;  %vm984_vm3 = vcmp.eq.s32.totalorder %v2004_v60, %v2473_v34 }
 0x2a8   :  { %v1327_v38 = vmul.f32 %v1248_v47, %v1248_v47 }
 0x2aa   :  { %v1333_v31 = vsel %vm1307_vm9, %v1327_v38, 0.0 }
 0x2ab   :  { %v1169_v36 = vpop.f32.mrf.mxu3 }
 0x2ac   :  { %v1170_v50 = vadd.f32 %v1492_v27, %v1169_v36 }
 0x2ad   :  { %v1238_v54 = vpop.f32.mrf.mxu1 }
 0x2ae   :  { %1183 = vst [vmem:[%s2643_s13 + $0x10] sm:$0xff] %v1170_v50  ;;  %v1249_v4 = vsub.f32 %v1170_v50, %v1235_v46  ;;  %v2485_v54 = vpop.permute.xlu2 %959 }
 0x2af   :  { %vm976_vm10 = vcmp.eq.s32.totalorder %v2004_v60, %v2485_v54  ;;  %vm977_vm11 = vcmp.eq.s32.totalorder %v2008_v61, %v2485_v54  ;;  %vm978_vm12 = vcmp.eq.s32.totalorder %v2178_v8, %v2485_v54  ;;  %vm979_vm15 = vcmp.eq.s32.totalorder %v2172_v5, %v2485_v54 }
 0x2b0   :  { %v1328_v11 = vmul.f32 %v1249_v4, %v1249_v4 }
 0x2b2   :  { %v1334_v35 = vsel %vm1307_vm9, %v1328_v11, 0.0 }
 0x2b3   :  { %v1339_v39 = vadd.f32 %v1334_v35, %v1333_v31  ;;  %v1172_v49 = vpop.f32.mrf.mxu3  ;;  %974 = vperm.xlu1 %1488, %v957_v17  }
 0x2b4   :  { %v1173_v52 = vadd.f32 %v1492_v27, %v1172_v49 }
 0x2b5   :  { %v1241_v55 = vpop.f32.mrf.mxu1 }
 0x2b6   :  { %1184 = vst [vmem:[%s2643_s13 + $0x18] sm:$0xff] %v1173_v52 }
 0x2bb   :  { %v1175_v58 = vpop.f32.mrf.mxu3 }
 0x2bc   :  { %v1176_v62 = vadd.f32 %v1492_v27, %v1175_v58 }
 0x2bd   :  { %v1244_v20 = vpop.f32.mrf.mxu1 }
 0x2be   :  { %1185 = vst [vmem:[%s2643_s13 + $0x20] sm:$0xff] %v1176_v62  ;;  %v1251_v0 = vsub.f32 %v1176_v62, %v1241_v55 }
 0x2c0   :  { %v1330_v3 = vmul.f32 %v1251_v0, %v1251_v0 }
 0x2c2   :  { %v1336_v6 = vsel %vm1307_vm9, %v1330_v3, 0.0 }
 0x2c3   :  { %v1178_v18 = vpop.f32.mrf.mxu3  ;;  %v1341_v21 = vadd.f32 %v1339_v39, %v1336_v6 }
 0x2c4   :  { %v1179_v16 = vadd.f32 %v1492_v27, %v1178_v18 }
 0x2c6   :  { %1186 = vst [vmem:[%s2643_s13 + $0x28] sm:$0xff] %v1179_v16  ;;  %v1252_v25 = vsub.f32 %v1179_v16, %v1244_v20  ;;  %s1744_s13 = smov [#allocation12]  }
 0x2c7   :  { %s1369_s17 = sshll.u32 %s1744_s13, 4  ;;  %s1370_s17 = int_to_ptr.vmem [resolvable:$true] %s1369_s17 }
 0x2c8   :  { %v1331_v28 = vmul.f32 %v1252_v25, %v1252_v25  ;;  %1377 = dma.vmem_to_hbm [thread:$0]  %s1370_s17, 768, %s1372_s20, [#allocation4], %s1737_s8, %s1737_s8, %s1738_s26  }
 0x2ca   :  { %v1337_v30 = vsel %vm1307_vm9, %v1331_v28, 0.0 }
 0x2cb   :  { %v2469_v33 = vadd.f32 %v1341_v21, %v1337_v30 }
 0x2e5   :  { %v2475_v37 = vpop.xlane.xlu0 %805 }
 0x2e6   :  { %v832_v27 = vsub.f32 %v2365_v41, %v2475_v37  ;;  %v833_v40 = vsub.f32 %v2361_v12, %v2475_v37  ;;  %v834_v32 = vsub.f32 %v2363_v13, %v2475_v37  ;;  %v835_v43 = vsub.f32 %v2369_v23, %v2475_v37 }
 0x2e8   :  { %v856_v46 = vmul.f32 1.442695, %v832_v27  ;;  %v858_v47 = vmul.f32 1.442695, %v833_v40  ;;  %v860_v36 = vmul.f32 1.442695, %v834_v32 }
 0x2e9   :  { %v862_v50 = vmul.f32 1.442695, %v835_v43 }
 0x2ea   :  { %1505 = vpow2.f32 %v856_v46 }
 0x2eb   :  { %1507 = vpow2.f32 %v858_v47 }
 0x2ec   :  { %1509 = vpow2.f32 %v860_v36 }
 0x2ed   :  { %v2487_v38 = vpop.xlane.xlu1 %810  ;;  %1511 = vpow2.f32 %v862_v50 }
 0x2ee   :  { %v836_v4 = vsub.f32 %v2377_v48, %v2487_v38  ;;  %v837_v11 = vsub.f32 %v2371_v44, %v2487_v38  ;;  %v838_v17 = vsub.f32 %v2373_v26, %v2487_v38  ;;  %v839_v35 = vsub.f32 %v2381_v42, %v2487_v38 }
 0x2f0   :  { %v1506_v31 = vpop.eup %1505  ;;  %v864_v39 = vmul.f32 1.442695, %v836_v4  ;;  %v866_v49 = vmul.f32 1.442695, %v837_v11  ;;  %v868_v55 = vmul.f32 1.442695, %v838_v17 }
 0x2f1   :  { %v1508_v52 = vpop.eup %1507  ;;  %v870_v3 = vmul.f32 1.442695, %v839_v35 }
 0x2f2   :  { %1513 = vpow2.f32 %v864_v39  ;;  %v904_v58 = vadd.f32 %v1508_v52, %v1506_v31  ;;  %v1510_v62 = vpop.eup %1509 }
 0x2f3   :  { %1515 = vpow2.f32 %v866_v49  ;;  %v1512_v18 = vpop.eup %1511 }
 0x2f4   :  { %v905_v0 = vadd.f32 %v1510_v62, %v904_v58  ;;  %1517 = vpow2.f32 %v868_v55 }
 0x2f5   :  { %v2497_v6 = vpop.xlane.xlu2 %815  ;;  %1519 = vpow2.f32 %v870_v3 }
 0x2f6   :  { %v840_v20 = vsub.f32 %v2389_v53, %v2497_v6  ;;  %v841_v21 = vsub.f32 %v2383_v45, %v2497_v6  ;;  %v842_v16 = vsub.f32 %v2386_v51, %v2497_v6  ;;  %v906_v25 = vadd.f32 %v1512_v18, %v905_v0 }
 0x2f7   :  { %v843_v30 = vsub.f32 %v2393_v56, %v2497_v6 }
 0x2f8   :  { %v1514_v28 = vpop.eup %1513  ;;  %v872_v27 = vmul.f32 1.442695, %v840_v20  ;;  %v874_v40 = vmul.f32 1.442695, %v841_v21  ;;  %v876_v43 = vmul.f32 1.442695, %v842_v16  ;;  %907 = vadd.xlane.f32.xlu0 %v906_v25 }
 0x2f9   :  { %v1516_v32 = vpop.eup %1515  ;;  %v878_v50 = vmul.f32 1.442695, %v843_v30 }
 0x2fa   :  { %1521 = vpow2.f32 %v872_v27  ;;  %v909_v46 = vadd.f32 %v1516_v32, %v1514_v28  ;;  %v1518_v47 = vpop.eup %1517 }
 0x2fb   :  { %1523 = vpow2.f32 %v874_v40  ;;  %v1520_v11 = vpop.eup %1519 }
 0x2fc   :  { %v910_v36 = vadd.f32 %v1518_v47, %v909_v46  ;;  %1525 = vpow2.f32 %v876_v43 }
 0x2fd   :  { %v2507_v4 = vpop.xlane.xlu2 %820  ;;  %1527 = vpow2.f32 %v878_v50 }
 0x2fe   :  { %v844_v17 = vsub.f32 %v2401_v63, %v2507_v4  ;;  %v845_v31 = vsub.f32 %v2395_v57, %v2507_v4  ;;  %v846_v35 = vsub.f32 %v2399_v7, %v2507_v4  ;;  %v911_v39 = vadd.f32 %v1520_v11, %v910_v36 }
 0x2ff   :  { %v847_v52 = vsub.f32 %v2405_v1, %v2507_v4 }
 0x300   :  { %v1522_v49 = vpop.eup %1521  ;;  %v880_v55 = vmul.f32 1.442695, %v844_v17  ;;  %v882_v58 = vmul.f32 1.442695, %v845_v31  ;;  %v884_v0 = vmul.f32 1.442695, %v846_v35  ;;  %912 = vadd.xlane.f32.xlu2 %v911_v39 }
 0x301   :  { %v1524_v62 = vpop.eup %1523  ;;  %v886_v21 = vmul.f32 1.442695, %v847_v52  ;;  %v1000_v35 = vsel %vm976_vm10, %v2365_v41, 0.0 }
 0x302   :  { %1529 = vpow2.f32 %v880_v55  ;;  %v914_v3 = vadd.f32 %v1524_v62, %v1522_v49  ;;  %v1526_v18 = vpop.eup %1525  ;;  %v1001_v55 = vsel %vm977_vm11, %v2361_v12, 0.0  ;;  %vm986_vm11 = vcmp.eq.s32.totalorder %v2178_v8, %v2473_v34 }
 0x303   :  { %1531 = vpow2.f32 %v882_v58  ;;  %v1528_v25 = vpop.eup %1527  ;;  %v1024_v41 = vadd.f32 %v1001_v55, %v1000_v35  ;;  %v1006_v35 = vsel %vm982_vm0, %v2373_v26, 0.0  ;;  %v1008_v26 = vsel %vm984_vm3, %v2389_v53, 0.0 }
 0x304   :  { %v915_v20 = vadd.f32 %v1526_v18, %v914_v3  ;;  %1533 = vpow2.f32 %v884_v0  ;;  %v1009_v53 = vsel %vm985_vm1, %v2383_v45, 0.0 }
 0x305   :  { %v2517_v16 = vpop.xlane.xlu0 %825  ;;  %1535 = vpow2.f32 %v886_v21 }
 0x306   :  { %v848_v28 = vsub.f32 %v2413_v15, %v2517_v16  ;;  %v849_v30 = vsub.f32 %v2407_v2, %v2517_v16  ;;  %v850_v27 = vsub.f32 %v2411_v10, %v2517_v16  ;;  %v851_v40 = vsub.f32 %v2417_v9, %v2517_v16 }
 0x307   :  { %v916_v32 = vadd.f32 %v1528_v25, %v915_v20 }
 0x308   :  { %v1530_v43 = vpop.eup %1529  ;;  %v888_v46 = vmul.f32 1.442695, %v848_v28  ;;  %v890_v47 = vmul.f32 1.442695, %v849_v30  ;;  %v892_v50 = vmul.f32 1.442695, %v850_v27 }
 0x309   :  { %v1532_v36 = vpop.eup %1531  ;;  %917 = vadd.xlane.f32.xlu1 %v916_v32  ;;  %v894_v31 = vmul.f32 1.442695, %v851_v40  ;;  %v1002_v30 = vsel %vm978_vm12, %v2363_v13, 0.0  ;;  %v1004_v27 = vsel %vm980_vm13, %v2377_v48, 0.0  ;;  %v1003_v13 = vsel %vm979_vm15, %v2369_v23, 0.0 }
 0x30a   :  { %1537 = vpow2.f32 %v888_v46  ;;  %v919_v11 = vadd.f32 %v1532_v36, %v1530_v43  ;;  %v1534_v17 = vpop.eup %1533  ;;  %v1025_v43 = vadd.f32 %v1024_v41, %v1002_v30  ;;  %v1010_v30 = vsel %vm986_vm11, %v2386_v51, 0.0 }
 0x30b   :  { %1539 = vpow2.f32 %v890_v47  ;;  %v1536_v52 = vpop.eup %1535  ;;  %v1005_v47 = vsel %vm981_vm14, %v2371_v44, 0.0  ;;  %vm987_vm13 = vcmp.eq.s32.totalorder %v2172_v5, %v2473_v34 }
 0x30c   :  { %v920_v39 = vadd.f32 %v1534_v17, %v919_v11  ;;  %1541 = vpow2.f32 %v892_v50  ;;  %v1029_v11 = vadd.f32 %v1005_v47, %v1004_v27  ;;  %v972_v17 = vpop.permute.xlu2 %971 }
 0x30d   :  { %v2532_v49 = vpop.xlane.xlu1 %830  ;;  %1543 = vpow2.f32 %v894_v31  ;;  %v1026_v31 = vadd.f32 %v1025_v43, %v1003_v13  ;;  %vm992_vm4 = vcmp.eq.s32.totalorder %v2004_v60, %v972_v17  ;;  %vm993_vm5 = vcmp.eq.s32.totalorder %v2008_v61, %v972_v17 }
 0x30e   :  { %v852_v58 = vsub.f32 %v2423_v24, %v2532_v49  ;;  %v853_v62 = vsub.f32 %v2419_v14, %v2532_v49  ;;  %v854_v0 = vsub.f32 %v2427_v19, %v2532_v49  ;;  %v855_v3 = vsub.f32 %v2430_v22, %v2532_v49 }
 0x30f   :  { %v921_v18 = vadd.f32 %v1536_v52, %v920_v39  ;;  %v1030_v39 = vadd.f32 %v1029_v11, %v1006_v35  ;;  %v1016_v41 = vsel %vm992_vm4, %v2413_v15, 0.0  ;;  %vm994_vm10 = vcmp.eq.s32.totalorder %v2178_v8, %v972_v17 }
 0x310   :  { %v1538_v20 = vpop.eup %1537  ;;  %v896_v21 = vmul.f32 1.442695, %v852_v58  ;;  %v898_v25 = vmul.f32 1.442695, %v853_v62  ;;  %v900_v12 = vmul.f32 1.442695, %v854_v0  ;;  %vm995_vm12 = vcmp.eq.s32.totalorder %v2172_v5, %v972_v17 }
 0x311   :  { %v1540_v28 = vpop.eup %1539  ;;  %922 = vadd.xlane.f32.xlu0 %v921_v18  ;;  %v902_v46 = vmul.f32 1.442695, %v855_v3  ;;  %v1017_v3 = vsel %vm993_vm5, %v2407_v2, 0.0  ;;  %v124_v13 = vshrl.u32 %v118_v59, 7 }
 0x312   :  { %1545 = vpow2.f32 %v896_v21  ;;  %v924_v40 = vadd.f32 %v1540_v28, %v1538_v20  ;;  %v1542_v32 = vpop.eup %1541  ;;  %v1034_v21 = vadd.f32 %v1009_v53, %v1008_v26 }
 0x313   :  { %1547 = vpow2.f32 %v898_v25  ;;  %v1544_v50 = vpop.eup %1543 }
 0x314   :  { %v925_v36 = vadd.f32 %v1542_v32, %v924_v40  ;;  %1549 = vpow2.f32 %v900_v12  ;;  %v1044_v12 = vadd.f32 %v1017_v3, %v1016_v41  ;;  %v1019_v32 = vsel %vm995_vm12, %v2417_v9, 0.0 }
 0x315   :  { %1551 = vpow2.f32 %v902_v46 }
 0x316   :  { %v926_v48 = vadd.f32 %v1544_v50, %v925_v36 }
 0x318   :  { %v1546_v44 = vpop.eup %1545  ;;  %927 = vadd.xlane.f32.xlu2 %v926_v48  ;;  %v969_v23 = vpop.permute.xlu0 %968 }
 0x319   :  { %v1548_v54 = vpop.eup %1547  ;;  %1027 = vadd.xlane.f32.xlu0 %v1026_v31  ;;  %vm988_vm6 = vcmp.eq.s32.totalorder %v2004_v60, %v969_v23  ;;  %vm989_vm7 = vcmp.eq.s32.totalorder %v2008_v61, %v969_v23  ;;  %vm990_vm8 = vcmp.eq.s32.totalorder %v2178_v8, %v969_v23  ;;  %vm991_vm9 = vcmp.eq.s32.totalorder %v2172_v5, %v969_v23 }
 0x31a   :  { %v929_v52 = vadd.f32 %v1548_v54, %v1546_v44  ;;  %v1012_v55 = vsel %vm988_vm6, %v2401_v63, 0.0  ;;  %v1013_v58 = vsel %vm989_vm7, %v2395_v57, 0.0  ;;  %v1550_v62 = vpop.eup %1549  ;;  %v1007_v57 = vsel %vm983_vm2, %v2381_v42, 0.0 }
 0x31b   :  { %v1039_v0 = vadd.f32 %v1013_v58, %v1012_v55  ;;  %v1014_v18 = vsel %vm990_vm8, %v2399_v7, 0.0  ;;  %v1552_v20 = vpop.eup %1551  ;;  %v1031_v15 = vadd.f32 %v1030_v39, %v1007_v57  ;;  %v1015_v2 = vsel %vm991_vm9, %v2405_v1, 0.0 }
 0x31c   :  { %v930_v63 = vadd.f32 %v1550_v62, %v929_v52  ;;  %v1035_v42 = vadd.f32 %v1034_v21, %v1010_v30  ;;  %v1018_v7 = vsel %vm994_vm10, %v2411_v10, 0.0  ;;  %v1011_v1 = vsel %vm987_vm13, %v2393_v56, 0.0 }
 0x31d   :  { %v1040_v25 = vadd.f32 %v1039_v0, %v1014_v18  ;;  %v1045_v29 = vadd.f32 %v1044_v12, %v1018_v7  ;;  %v126_v39 = vadd.s32 16, %v124_v13  ;;  %vm1096_vm2 = vcmask 7168  }
 0x31e   :  { %v931_v28 = vadd.f32 %v1552_v20, %v930_v63  ;;  %v1036_v40 = vadd.f32 %v1035_v42, %v1011_v1 }
 0x31f   :  { %v1041_v45 = vadd.f32 %v1040_v25, %v1015_v2  ;;  %v1046_v51 = vadd.f32 %v1045_v29, %v1019_v32  ;;  %vm1062_vm3 = vcmp.ne.s32.totalorder %v126_v39, 23 }
 0x320   :  { %932 = vadd.xlane.f32.xlu1 %v931_v28  ;;  %1032 = vadd.xlane.f32.xlu2 %v1031_v15  ;;  %v129_v15 = vadd.s32 40, %v124_v13 }
 0x321   :  { %1042 = vadd.xlane.f32.xlu0 %v1041_v45 }
 0x322   :  { %vm1077_vm4 = vcmp.ne.s32.totalorder %v129_v15, 47 }
 0x325   :  { %v975_v27 = vpop.permute.xlu1 %974 }
 0x326   :  { %vm996_vm14 = vcmp.eq.s32.totalorder %v2004_v60, %v975_v27  ;;  %vm997_vm15 = vcmp.eq.s32.totalorder %v2008_v61, %v975_v27  ;;  %vm998_vm0 = vcmp.eq.s32.totalorder %v2178_v8, %v975_v27  ;;  %vm999_vm1 = vcmp.eq.s32.totalorder %v2172_v5, %v975_v27 }
 0x327   :  { %v1020_v10 = vsel %vm996_vm14, %v2423_v24, 0.0  ;;  %v1021_v43 = vsel %vm997_vm15, %v2419_v14, 0.0  ;;  %v1022_v34 = vsel %vm998_vm0, %v2427_v19, 0.0  ;;  %v1023_v9 = vsel %vm999_vm1, %v2430_v22, 0.0 }
 0x328   :  { %1037 = vadd.xlane.f32.xlu1 %v1036_v40  ;;  %1047 = vadd.xlane.f32.xlu2 %v1046_v51  ;;  %v1049_v56 = vadd.f32 %v1021_v43, %v1020_v10 }
 0x32a   :  { %v1050_v46 = vadd.f32 %v1049_v56, %v1022_v34 }
 0x32c   :  { %v1051_v60 = vadd.f32 %v1050_v46, %v1023_v9 }
 0x330   :  { %1052 = vadd.xlane.f32.xlu1 %v1051_v60  ;;  %1343 = vadd.xlane.f32.xlu2 %v2469_v33 }
 0x36b   :  { %v908_v61 = vpop.xlane.xlu0 %907 }
 0x373   :  { %v913_v8 = vpop.xlane.xlu2 %912 }
 0x374   :  { %1553 = vlog2.f32 %v913_v8 }
 0x375   :  { %1555 = vlog2.f32 %v908_v61 }
 0x37a   :  { %v1554_v36 = vpop.eup %1553 }
 0x37b   :  { %v1556_v5 = vpop.eup %1555  ;;  %v937_v50 = vmul.f32 0.6931472, %v1554_v36 }
 0x37c   :  { %v918_v14 = vpop.xlane.xlu1 %917  ;;  %v935_v22 = vmul.f32 0.6931472, %v1556_v5 }
 0x37d   :  { %1557 = vlog2.f32 %v918_v14  ;;  %v947_v31 = vadd.f32 %v937_v50, %v2487_v38 }
 0x37e   :  { %v946_v23 = vadd.f32 %v935_v22, %v2475_v37 }
 0x383   :  { %v1558_v11 = vpop.eup %1557 }
 0x384   :  { %v923_v24 = vpop.xlane.xlu0 %922  ;;  %v939_v44 = vmul.f32 0.6931472, %v1558_v11 }
 0x385   :  { %1559 = vlog2.f32 %v923_v24 }
 0x386   :  { %v948_v58 = vadd.f32 %v939_v44, %v2497_v6 }
 0x38b   :  { %v928_v47 = vpop.xlane.xlu2 %927  ;;  %v1560_v33 = vpop.eup %1559 }
 0x38c   :  { %1561 = vlog2.f32 %v928_v47  ;;  %v1028_v19 = vpop.xlane.xlu0 %1027  ;;  %v941_v35 = vmul.f32 0.6931472, %v1560_v33 }
 0x38d   :  { %v1084_v52 = vsub.f32 %v946_v23, %v1028_v19 }
 0x38e   :  { %v949_v41 = vadd.f32 %v941_v35, %v2507_v4 }
 0x38f   :  { %v1097_v53 = vsel %vm1096_vm2, %v1084_v52, 0.0 }
 0x392   :  { %v1562_v26 = vpop.eup %1561 }
 0x393   :  { %v933_v17 = vpop.xlane.xlu1 %932  ;;  %v1033_v48 = vpop.xlane.xlu2 %1032  ;;  %v943_v0 = vmul.f32 0.6931472, %v1562_v26 }
 0x394   :  { %1563 = vlog2.f32 %v933_v17  ;;  %v1085_v54 = vsub.f32 %v947_v31, %v1033_v48  ;;  %v1043_v55 = vpop.xlane.xlu0 %1042 }
 0x395   :  { %v1087_v37 = vsub.f32 %v949_v41, %v1043_v55  ;;  %v950_v6 = vadd.f32 %v943_v0, %v2517_v16  ;;  %v1745_v16 = vmov 46.0  }
 0x396   :  { %v1098_v59 = vsel %vm1096_vm2, %v1085_v54, 0.0  ;;  %1565 = vrcp.f32 %v1745_v16 }
 0x397   :  { %v1099_v57 = vadd.f32 %v1098_v59, %v1097_v53  ;;  %v1102_v28 = vsel %vm1096_vm2, %v1087_v37, 0.0 }
 0x39a   :  { %v1564_v62 = vpop.eup %1563 }
 0x39b   :  { %v1038_v38 = vpop.xlane.xlu1 %1037  ;;  %v945_v63 = vmul.f32 0.6931472, %v1564_v62  ;;  %v1048_v20 = vpop.xlane.xlu2 %1047 }
 0x39c   :  { %v1086_v3 = vsub.f32 %v948_v58, %v1038_v38  ;;  %v1088_v2 = vsub.f32 %v950_v6, %v1048_v20  ;;  %v1566_v32 = vpop.eup %1565 }
 0x39d   :  { %v951_v4 = vadd.f32 %v945_v63, %v2532_v49  ;;  %v1746_v49 = vmov 128.0   ;;  %v1118_v43 = vmul.f32 46.0, %v1566_v32  ;;  %vm1122_vm5 = vweird.f32 %v1566_v32 }
 0x39e   :  { %v1092_v18 = vsel %vm1062_vm3, %v1086_v3, 0.0  ;;  %v1104_v42 = vsel %vm1096_vm2, %v1088_v2, 0.0  ;;  %1567 = vrcp.f32 %v1746_v49 }
 0x39f   :  { %v1100_v21 = vsel %vm1096_vm2, %v1092_v18, 0.0  ;;  %v1119_v46 = vsub.f32 1.0, %v1118_v43 }
 0x3a0   :  { %v1101_v25 = vadd.f32 %v1100_v21, %v1099_v57 }
 0x3a1   :  { %v1120_v14 = vmul.f32 %v1566_v32, %v1119_v46 }
 0x3a2   :  { %v1103_v12 = vadd.f32 %v1102_v28, %v1101_v25 }
 0x3a3   :  { %v1053_v45 = vpop.xlane.xlu1 %1052  ;;  %v1344_v40 = vpop.xlane.xlu2 %1343  ;;  %v1121_v19 = vadd.f32 %v1566_v32, %v1120_v14 }
 0x3a4   :  { %v1089_v30 = vsub.f32 %v951_v4, %v1053_v45  ;;  %v1105_v29 = vadd.f32 %v1104_v42, %v1103_v12  ;;  %v1345_v51 = vrot.slane %v1344_v40, 4  ;;  %v1568_v10 = vpop.eup %1567 }
 0x3a5   :  { %v1353_v34 = vmul.f32 128.0, %v1568_v10  ;;  %vm1357_vm6 = vweird.f32 %v1568_v10  ;;  %v1123_v33 = vsel %vm1122_vm5, %v1566_v32, %v1121_v19 }
 0x3a6   :  { %v1095_v7 = vsel %vm1077_vm4, %v1089_v30, 0.0  ;;  %v1346_v56 = vadd.f32 %v1345_v51, %v1344_v40 }
 0x3a7   :  { %v1106_v1 = vsel %vm1096_vm2, %v1095_v7, 0.0  ;;  %v1354_v8 = vsub.f32 1.0, %v1353_v34 }
 0x3a8   :  { %v1107_v27 = vadd.f32 %v1106_v1, %v1105_v29  ;;  %v1347_v60 = vrot.slane %v1346_v56, 2 }
 0x3a9   :  { %v1355_v5 = vmul.f32 %v1568_v10, %v1354_v8 }
 0x3aa   :  { %1108 = vadd.xlane.f32.xlu0 %v1107_v27  ;;  %v1348_v47 = vadd.f32 %v1347_v60, %v1346_v56 }
 0x3ab   :  { %v1356_v17 = vadd.f32 %v1568_v10, %v1355_v5 }
 0x3ac   :  { %v1349_v22 = vrot.slane %v1348_v47, 1 }
 0x3ad   :  { %v1358_v31 = vsel %vm1357_vm6, %v1568_v10, %v1356_v17 }
 0x3ae   :  { %v1350_v48 = vadd.f32 %v1349_v22, %v1348_v47 }
 0x41d   :  { %v1109_v9 = vpop.xlane.xlu0 %1108 }
 0x41e   :  { %v1110_v61 = vrot.slane %v1109_v9, 4 }
 0x420   :  { %v1111_v24 = vadd.f32 %v1110_v61, %v1109_v9 }
 0x422   :  { %v1112_v36 = vrot.slane %v1111_v24, 2 }
 0x424   :  { %v1113_v50 = vadd.f32 %v1112_v36, %v1111_v24 }
 0x426   :  { %v1114_v11 = vrot.slane %v1113_v50, 1 }
 0x428   :  { %v1115_v13 = vadd.f32 %v1114_v11, %v1113_v50 }
 0x42a   :  { %1466 = vpush %v1115_v13 }
 0x42b   :  { %1468 = vpush %v1123_v33 }
 0x42c   :  { %1470 = vpush %v1350_v48 }
 0x42d   :  { %1472 = vpush %v1358_v31 }
 0x45b   :  { %s1467_s12 = spop %1466 }
 0x45c   :  { %s1469_s11 = spop %1468 }
 0x45d   :  { %s1125_s21 = smul.f32 %s1469_s11, %s1467_s12  ;;  %s1471_s22 = spop %1470 }
 0x45e   :  { %s1473_s4 = spop %1472 }
 0x45f   :  { %1362 = sst [smem:[#allocation13]] %s1125_s21  ;;  %s1360_s3 = smul.f32 %s1473_s4, %s1471_s22 }
 0x461   :  { %1364 = sst [smem:[#allocation13 + $0x1]] %s1360_s3 }
 0x462   :  { %1388 = dma.smem_to_vmem %s1747_s23, 16, %s1386_s9, [#allocation5]  }
 0x463   :  { %1731 = dma.done.wait [#allocation4], 768  }
 0x464   :  { %1732 = vsyncadd [#allocation4], 4294966528 }
 0x465   :  { %1733 = dma.done.wait [#allocation5], 16  }
 0x466   :  { %1734 = vsyncadd [#allocation5], 4294967280 }
 0x467   :  { %1399 = sfence }
 0x468   :  { %1400 = vsyncpa [#allocation3], 1 }
 0x469   :  { %1401 = vsyncpa [#allocation7], 1 }
 0x46a   :  { %1402 = vsyncpa [#allocation10], 1 }
 0x46b   :  { %1403 = vsyncpa [#allocation4], 1 }
 0x46c   :  { %1404 = vsyncpa [#allocation5], 1 }

</bundles_post_ra>
